<compile_context>
chip_gen: v7x
topology: tpu7x:2x2x1
jax: 0.10.0
libtpu: 0.0.40
codegen_flags: <defaults>
</compile_context>

<pallas_src>
from functools import partial

import jax
import jax.numpy as jnp
from jax import lax
from jax.experimental import pallas as pl
from jax.experimental.pallas import tpu as pltpu

EPS = 1e-5


def _vmem_limit_bytes():
    """Generation-aware VMEM budget for the pallas_calls."""
    try:
        cap = int(pltpu.get_tpu_info().vmem_capacity_bytes)
    except Exception:  # non-TPU trace / older jax: assume v5e/v6e capacity
        cap = 128 * 1024 * 1024
    # ~25% headroom for compiler scratch; v5e/v6e -> 96 MiB, v7x -> 48 MiB.
    return int(min(96 * 1024 * 1024, max(32 * 1024 * 1024, cap * 3 // 4)))


# ---------------------------------------------------------------------------
# Pass 1 kernels: conv as a matmul (taps folded into K) + BN partial stats.
# ---------------------------------------------------------------------------
def _conv_stats_fullk_kernel(p_ref, w_ref, y_ref, psum_ref, psq_ref):
    # Weights are VMEM-resident (constant block index); f32 MXU accumulation.
    acc = jnp.dot(p_ref[...], w_ref[...], preferred_element_type=jnp.float32)
    y_ref[...] = acc.astype(y_ref.dtype)
    s = jnp.sum(acc, axis=0, keepdims=True)             # (1, Cout)
    ss = jnp.sum(acc * acc, axis=0, keepdims=True)       # (1, Cout)
    psum_ref[...] = jnp.broadcast_to(s[:, None, :], psum_ref.shape)
    psq_ref[...] = jnp.broadcast_to(ss[:, None, :], psq_ref.shape)


def _conv_stats_chunked_kernel(p_ref, w_ref, y_ref, psum_ref, psq_ref, acc_ref):
    # Fallback when (tm, K) + (K, Cout) do not fit VMEM: K chunked, accumulated
    # into an f32 VMEM scratch; y (possibly bf16) written once on the last step.
    k = pl.program_id(1)

    @pl.when(k == 0)
    def _():
        acc_ref[...] = jnp.zeros_like(acc_ref)

    acc_ref[...] += jnp.dot(p_ref[...], w_ref[...],
                            preferred_element_type=jnp.float32)

    @pl.when(k == pl.num_programs(1) - 1)
    def _():
        acc = acc_ref[...]
        y_ref[...] = acc.astype(y_ref.dtype)
        s = jnp.sum(acc, axis=0, keepdims=True)
        ss = jnp.sum(acc * acc, axis=0, keepdims=True)
        psum_ref[...] = jnp.broadcast_to(s[:, None, :], psum_ref.shape)
        psq_ref[...] = jnp.broadcast_to(ss[:, None, :], psq_ref.shape)


# ---------------------------------------------------------------------------
# Pass 2 kernels: normalize (+ optional residual) + ReLU, math in f32.
# ---------------------------------------------------------------------------
def _bn_act_kernel(y_ref, scale_ref, shift_ref, out_ref):
    y = y_ref[...].astype(jnp.float32) * scale_ref[...] + shift_ref[...]
    out_ref[...] = jnp.maximum(y, 0.0).astype(out_ref.dtype)


def _bn_res_act_kernel(y_ref, scale_ref, shift_ref, res_ref, out_ref):
    y = (y_ref[...].astype(jnp.float32) * scale_ref[...] + shift_ref[...]
         + res_ref[...].astype(jnp.float32))
    out_ref[...] = jnp.maximum(y, 0.0).astype(out_ref.dtype)


# ---------------------------------------------------------------------------
# Tile planning
# ---------------------------------------------------------------------------
def _plan_conv_tiles(m, k, cout, itemsize, vmem_limit):
    """Pick (tm, tk); tk == k means full-K (weights stay VMEM-resident)."""
    usable = int(vmem_limit * 0.7)
    stats = 2 * 2 * 8 * cout * 4                      # double-buffered psum/psq
    w_full = 2 * k * cout * itemsize                  # weight slab (2-buf bound)
    for tm in (2048, 1024, 512, 256, 128, 64, 32, 16, 8):
        if tm > max(m, 8):
            continue
        need = 2 * tm * k * itemsize + w_full + 2 * tm * cout * itemsize + stats
        if need <= usable:
            return tm, k
    # Chunked-K fallback (very large K x Cout).  tk multiples of 256 (full MXU K
    # occupancy on v6e/v7x); 128 only as a last resort.
    for tm in (1024, 512, 256, 128, 64, 32, 16, 8):
        if tm > max(m, 8):
            continue
        for tk in (4096, 2048, 1024, 512, 256, 128):
            if tk >= k:
                continue
            need = (2 * tm * tk * itemsize + 2 * tk * cout * itemsize
                    + tm * cout * 4 + 2 * tm * cout * itemsize + stats)
            if need <= usable:
                return tm, tk
    return 8, 128


# ---------------------------------------------------------------------------
# pallas_call wrappers
# ---------------------------------------------------------------------------
def _conv_pass(patches, w_mat, tm, tk, y_dtype, vmem_limit):
    m_pad, k_pad = patches.shape
    cout = w_mat.shape[1]
    g = m_pad // tm
    y_item = jnp.dtype(y_dtype).itemsize

    out_shape = (
        jax.ShapeDtypeStruct((m_pad, cout), y_dtype),
        jax.ShapeDtypeStruct((g, 8, cout), jnp.float32),
        jax.ShapeDtypeStruct((g, 8, cout), jnp.float32),
    )
    flops = int(2 * m_pad * k_pad * cout)

    if tk == k_pad:
        # Full K: weights DMA'd once (constant block index), single grid axis.
        bytes_accessed = int(patches.size * patches.dtype.itemsize
                             + w_mat.size * w_mat.dtype.itemsize
                             + m_pad * cout * y_item + 2 * g * 8 * cout * 4)
        y, psum, psq = pl.pallas_call(
            _conv_stats_fullk_kernel,
            out_shape=out_shape,
            grid_spec=pltpu.PrefetchScalarGridSpec(
                num_scalar_prefetch=0,
                grid=(g,),
                in_specs=[
                    pl.BlockSpec((tm, k_pad), lambda i: (i, 0)),
                    pl.BlockSpec((k_pad, cout), lambda i: (0, 0)),   # resident
                ],
                out_specs=[
                    pl.BlockSpec((tm, cout), lambda i: (i, 0)),
                    pl.BlockSpec((1, 8, cout), lambda i: (i, 0, 0)),
                    pl.BlockSpec((1, 8, cout), lambda i: (i, 0, 0)),
                ],
            ),
            compiler_params=pltpu.CompilerParams(
                dimension_semantics=("parallel",),
                vmem_limit_bytes=vmem_limit),
            cost_estimate=pl.CostEstimate(flops=flops, transcendentals=0,
                                          bytes_accessed=bytes_accessed),
        )(patches, w_mat)
    else:
        kt = k_pad // tk
        bytes_accessed = int(patches.size * patches.dtype.itemsize
                             + g * w_mat.size * w_mat.dtype.itemsize
                             + m_pad * cout * y_item + 2 * g * 8 * cout * 4)
        y, psum, psq = pl.pallas_call(
            _conv_stats_chunked_kernel,
            out_shape=out_shape,
            grid_spec=pltpu.PrefetchScalarGridSpec(
                num_scalar_prefetch=0,
                grid=(g, kt),
                in_specs=[
                    pl.BlockSpec((tm, tk), lambda i, k: (i, k)),
                    pl.BlockSpec((tk, cout), lambda i, k: (k, 0)),
                ],
                out_specs=[
                    pl.BlockSpec((tm, cout), lambda i, k: (i, 0)),
                    pl.BlockSpec((1, 8, cout), lambda i, k: (i, 0, 0)),
                    pl.BlockSpec((1, 8, cout), lambda i, k: (i, 0, 0)),
                ],
                scratch_shapes=[pltpu.VMEM((tm, cout), jnp.float32)],
            ),
            compiler_params=pltpu.CompilerParams(
                dimension_semantics=("parallel", "arbitrary"),
                vmem_limit_bytes=vmem_limit),
            cost_estimate=pl.CostEstimate(flops=flops, transcendentals=0,
                                          bytes_accessed=bytes_accessed),
        )(patches, w_mat)
    return y, psum[:, 0, :], psq[:, 0, :]


def _bn_act_pass(y, scale, shift, residual, out_dtype, vmem_limit):
    m_pad, cout = y.shape

    # Lane-densify: fold spatial rows into lanes when Cout < 128 so stores are
    # unmasked (vst) rather than masked partial stores.
    fold = 1
    while (fold * 2 * cout <= 128 and m_pad % (fold * 2) == 0
           and (m_pad // (fold * 2)) % 8 == 0):
        fold *= 2
    rows = m_pad // fold
    width = fold * cout

    y_f = y.reshape(rows, width)
    scale_f = jnp.tile(scale.reshape(1, cout), (1, fold)).astype(jnp.float32)
    shift_f = jnp.tile(shift.reshape(1, cout), (1, fold)).astype(jnp.float32)

    out_item = jnp.dtype(out_dtype).itemsize
    bytes_per_row = width * (y.dtype.itemsize + out_item
                             + (residual.dtype.itemsize if residual is not None else 0))
    usable = int(vmem_limit * 0.6)
    tm2 = rows
    if 2 * rows * bytes_per_row > usable:
        tm2 = 8
        for cand in (16384, 8192, 4096, 2048, 1024, 512, 256, 128, 64, 32, 16, 8):
            if cand <= rows and rows % cand == 0 and 2 * cand * bytes_per_row <= usable:
                tm2 = cand
                break

    args = [y_f, scale_f, shift_f]
    in_specs = [
        pl.BlockSpec((tm2, width), lambda i: (i, 0)),
        pl.BlockSpec((1, width), lambda i: (0, 0)),
        pl.BlockSpec((1, width), lambda i: (0, 0)),
    ]
    kernel = _bn_act_kernel
    res_bytes = 0
    if residual is not None:
        res_f = residual.reshape(rows, width)
        args.append(res_f)
        in_specs.append(pl.BlockSpec((tm2, width), lambda i: (i, 0)))
        kernel = _bn_res_act_kernel
        res_bytes = int(res_f.size * res_f.dtype.itemsize)

    # Alias y to the output when dtypes match -> no extra HBM allocation.
    alias = {0: 0} if y_f.dtype == jnp.dtype(out_dtype) else {}
    flops = int(rows * width * (4 if residual is not None else 3))
    bytes_accessed = int(y_f.size * y_f.dtype.itemsize
                         + rows * width * out_item + res_bytes)

    out = pl.pallas_call(
        kernel,
        out_shape=jax.ShapeDtypeStruct((rows, width), out_dtype),
        grid_spec=pltpu.PrefetchScalarGridSpec(
            num_scalar_prefetch=0,
            grid=(rows // tm2,),
            in_specs=in_specs,
            out_specs=pl.BlockSpec((tm2, width), lambda i: (i, 0)),
        ),
        compiler_params=pltpu.CompilerParams(
            dimension_semantics=("parallel",),
            vmem_limit_bytes=vmem_limit),
        cost_estimate=pl.CostEstimate(flops=flops, transcendentals=0,
                                      bytes_accessed=bytes_accessed),
        input_output_aliases=alias,
    )(*args)
    return out.reshape(m_pad, cout)


# ---------------------------------------------------------------------------
# JAX glue: im2col (taps folded into K), weight matrix, BN finalize.
# ---------------------------------------------------------------------------
def _im2col_3x3x3(x_ndhwc, compute_dtype):
    # TODO(synk): replace with in-kernel halo DMA (see header) — kept
    # materialized (in bf16) here for lowering robustness.
    n, d, h, w, c = x_ndhwc.shape
    x = x_ndhwc.astype(compute_dtype)
    xp = jnp.pad(x, ((0, 0), (1, 1), (1, 1), (1, 1), (0, 0)))
    taps = [xp[:, kd:kd + d, kh:kh + h, kw:kw + w, :]
            for kd in range(3) for kh in range(3) for kw in range(3)]
    patches = jnp.concatenate(taps, axis=-1)              # (N, D, H, W, 27*C)
    return patches.reshape(n * d * h * w, 27 * c)


def _weight_matrix(w_oidhw, compute_dtype):
    cout, cin = w_oidhw.shape[:2]
    wm = jnp.transpose(w_oidhw, (2, 3, 4, 1, 0)).reshape(27 * cin, cout)
    return wm.astype(compute_dtype)


def _conv_bn_act(x_ndhwc, w_oidhw, gamma, beta, residual_flat,
                 compute_dtype, out_dtype, vmem_limit):
    n, d, h, w, cin = x_ndhwc.shape
    cout = w_oidhw.shape[0]
    m = n * d * h * w

    patches = _im2col_3x3x3(x_ndhwc, compute_dtype)        # (M, 27*Cin)
    w_mat = _weight_matrix(w_oidhw, compute_dtype)         # (27*Cin, Cout)

    k_total = patches.shape[1]
    itemsize = jnp.dtype(compute_dtype).itemsize
    tm, tk = _plan_conv_tiles(m, k_total, cout, itemsize, vmem_limit)

    m_pad = ((m + tm - 1) // tm) * tm
    if tk != k_total:                                      # zero K-padding exact
        k_pad = ((k_total + tk - 1) // tk) * tk
        patches = jnp.pad(patches, ((0, 0), (0, k_pad - k_total)))
        w_mat = jnp.pad(w_mat, ((0, k_pad - k_total), (0, 0)))
    if m_pad != m:                                         # zero rows -> no stat effect
        patches = jnp.pad(patches, ((0, m_pad - m), (0, 0)))

    y, psum, psq = _conv_pass(patches, w_mat, tm, tk, compute_dtype, vmem_limit)

    # BatchNorm3d training-mode batch statistics over the true M rows (biased
    # variance).  NOTE: E[x^2]-E[x]^2 in f32; switch to shifted sums if
    # tolerances tighten.
    total = jnp.sum(psum, axis=0)
    total_sq = jnp.sum(psq, axis=0)
    mean = total / m
    var = jnp.maximum(total_sq / m - mean * mean, 0.0)
    inv_std = lax.rsqrt(var + EPS)
    scale = (gamma * inv_std).astype(jnp.float32)
    shift = (beta - mean * gamma * inv_std).astype(jnp.float32)

    res = None
    if residual_flat is not None:
        res = residual_flat.astype(compute_dtype)
        if m_pad != m:
            res = jnp.pad(res, ((0, m_pad - m), (0, 0)))

    out = _bn_act_pass(y, scale, shift, res, out_dtype, vmem_limit)
    return out[:m]                                          # (M, Cout)


@partial(jax.jit, static_argnames=("compute_dtype", "vmem_limit"))
def _basic_block_forward(x_ncdhw, w1, g1, b1, w2, g2, b2, *,
                         compute_dtype, vmem_limit):
    n, c, d, h, w = x_ncdhw.shape
    x = jnp.transpose(x_ncdhw, (0, 2, 3, 4, 1))            # NDHWC
    m = n * d * h * w

    # conv1 -> bn1 -> relu   (activation kept in compute_dtype for conv2)
    out1 = _conv_bn_act(x, w1, g1, b1, None, compute_dtype, compute_dtype,
                        vmem_limit)
    out1_ndhwc = out1.reshape(n, d, h, w, -1)

    # conv2 -> bn2 -> +x -> relu   (final output in f32)
    residual = x.reshape(m, c)
    out2 = _conv_bn_act(out1_ndhwc, w2, g2, b2, residual, compute_dtype,
                        jnp.float32, vmem_limit)
    out2_ndhwc = out2.reshape(n, d, h, w, -1)
    return jnp.transpose(out2_ndhwc, (0, 4, 1, 2, 3))      # NCDHW


class BasicBlockPallas:
    """Pallas port of BasicBlock(inplanes, planes, stride=1, downsample=None)."""

    def __init__(self, inplanes, planes, stride=1, key=None,
                 compute_dtype=jnp.bfloat16):
        assert stride == 1 and inplanes == planes, "downsample=None case only"
        if key is None:
            key = jax.random.PRNGKey(42)
        k1, k2 = jax.random.split(key)
        fan_in = inplanes * 27
        bound = 1.0 / (fan_in ** 0.5)
        # deterministic synthetic conv weights, PyTorch layout (Cout, Cin, 3,3,3)
        self.w1 = jax.random.uniform(k1, (planes, inplanes, 3, 3, 3),
                                     jnp.float32, -bound, bound)
        self.w2 = jax.random.uniform(k2, (planes, planes, 3, 3, 3),
                                     jnp.float32, -bound, bound)
        # BatchNorm3d defaults: weight=1, bias=0
        self.g1 = jnp.ones((planes,), jnp.float32)
        self.b1 = jnp.zeros((planes,), jnp.float32)
        self.g2 = jnp.ones((planes,), jnp.float32)
        self.b2 = jnp.zeros((planes,), jnp.float32)
        self.compute_dtype = compute_dtype
        self.vmem_limit = _vmem_limit_bytes()

    def __call__(self, x_ncdhw):
        return _basic_block_forward(
            x_ncdhw, self.w1, self.g1, self.b1, self.w2, self.g2, self.b2,
            compute_dtype=self.compute_dtype, vmem_limit=self.vmem_limit)


def _reference_block(x_ncdhw, blk):
    """Plain-JAX f32 reference of the PyTorch forward (train-mode BN)."""
    def conv(xc, wgt):
        return lax.conv_general_dilated(
            xc, jnp.transpose(wgt, (2, 3, 4, 1, 0)),
            window_strides=(1, 1, 1), padding=((1, 1),) * 3,
            dimension_numbers=('NDHWC', 'DHWIO', 'NDHWC'))

    def bn(y, g, b):
        mu = jnp.mean(y, axis=(0, 1, 2, 3), keepdims=True)
        var = jnp.mean((y - mu) ** 2, axis=(0, 1, 2, 3), keepdims=True)
        return (y - mu) * lax.rsqrt(var + EPS) * g + b

    xc = jnp.transpose(x_ncdhw, (0, 2, 3, 4, 1)).astype(jnp.float32)
    out = jax.nn.relu(bn(conv(xc, blk.w1), blk.g1, blk.b1))
    out = jax.nn.relu(bn(conv(out, blk.w2), blk.g2, blk.b2) + xc)
    return jnp.transpose(out, (0, 4, 1, 2, 3))


if __name__ == "__main__":
    # small shapes: batch=2, channels=4, spatial D=H=W=8 (NCDHW like PyTorch)
    inplanes = planes = 4
    N, D, H, W = 2, 8, 8, 8
    x = jax.random.normal(jax.random.PRNGKey(0), (N, inplanes, D, H, W),
                          jnp.float32)

    # Production path: bf16 MXU compute, f32 accumulation (loose tolerance vs
    # the f32 reference).
    block = BasicBlockPallas(inplanes, planes, stride=1)
    out = jax.block_until_ready(block(x))
    assert out.shape == (N, planes, D, H, W), out.shape
    ref = _reference_block(x, block)
    err_bf16 = float(jnp.max(jnp.abs(out - ref)))
    assert jnp.allclose(out, ref, rtol=5e-2, atol=5e-2), err_bf16

    # f32 compute path: tight numerical check of the kernel structure.
    block32 = BasicBlockPallas(inplanes, planes, stride=1,
                               compute_dtype=jnp.float32)
    out32 = jax.block_until_ready(block32(x))
    ref32 = _reference_block(x, block32)
    err_f32 = float(jnp.max(jnp.abs(out32 - ref32)))
    assert jnp.allclose(out32, ref32, rtol=1e-3, atol=1e-3), err_f32

    print("KERNEL_OK")
</pallas_src>

<mosaic_0001>
module attributes {stable_mosaic.version = 11 : i64} {
  func.func @_conv_stats_fullk_kernel(%arg0: i32, %arg1: memref<1024x108xbf16, #tpu.memory_space<vmem>>, %arg2: memref<108x4xbf16, #tpu.memory_space<vmem>>, %arg3: memref<1024x4xbf16, #tpu.memory_space<vmem>>, %arg4: memref<1x8x4xf32, #tpu.memory_space<vmem>>, %arg5: memref<1x8x4xf32, #tpu.memory_space<vmem>>) attributes {dimension_semantics = [#tpu.dimension_semantics<parallel>], iteration_bounds = array<i64: 1>, scalar_prefetch = 0 : i64, scratch_operands = 0 : i64, tpu.core_type = #tpu.core_type<tc>, window_params = [{transform_indices = @transform_0, window_bounds = array<i64: 1024, 108>}, {pipeline_mode = #tpu.pipeline_mode<synchronous>, transform_indices = @transform_1, window_bounds = array<i64: 108, 4>}, {transform_indices = @transform_2, window_bounds = array<i64: 1024, 4>}, {transform_indices = @transform_3, window_bounds = array<i64: 1, 8, 4>}, {transform_indices = @transform_4, window_bounds = array<i64: 1, 8, 4>}]} {
    %c0 = arith.constant 0 : index
    %c0_0 = arith.constant 0 : index
    %0 = vector.load %arg1[%c0, %c0_0] : memref<1024x108xbf16, #tpu.memory_space<vmem>>, vector<1024x108xbf16>
    %c0_1 = arith.constant 0 : index
    %c0_2 = arith.constant 0 : index
    %1 = vector.load %arg2[%c0_1, %c0_2] : memref<108x4xbf16, #tpu.memory_space<vmem>>, vector<108x4xbf16>
    %cst = arith.constant dense<0.000000e+00> : vector<1024x4xf32>
    %2 = tpu.matmul %0, %1, %cst {dimension_numbers = #tpu.dot_dimension_numbers<[1], [0], [0], [1], [0, 0, 1, 1], [], []>} : vector<1024x108xbf16>, vector<108x4xbf16>, vector<1024x4xf32> -> vector<1024x4xf32>
    %3 = arith.truncf %2 : vector<1024x4xf32> to vector<1024x4xbf16>
    %c0_3 = arith.constant 0 : index
    %c0_4 = arith.constant 0 : index
    %4 = vector.load %arg3[%c0_3, %c0_4] : memref<1024x4xbf16, #tpu.memory_space<vmem>>, vector<1024x4xbf16>
    tpu.vector_store %arg3[%c0_3, %c0_4], %3 {strides = array<i32>} : memref<1024x4xbf16, #tpu.memory_space<vmem>>, vector<1024x4xbf16>,
    %cst_5 = arith.constant dense<0.000000e+00> : vector<4xf32>
    %5 = vector.multi_reduction <add>, %2, %cst_5 [0] : vector<1024x4xf32> to vector<4xf32>
    %6 = vector.shape_cast %5 : vector<4xf32> to vector<1x4xf32>
    %7 = arith.mulf %2, %2 : vector<1024x4xf32>
    %cst_6 = arith.constant dense<0.000000e+00> : vector<4xf32>
    %8 = vector.multi_reduction <add>, %7, %cst_6 [0] : vector<1024x4xf32> to vector<4xf32>
    %9 = vector.shape_cast %8 : vector<4xf32> to vector<1x4xf32>
    %10 = vector.shape_cast %6 : vector<1x4xf32> to vector<1x1x4xf32>
    %11 = vector.shape_cast %10 : vector<1x1x4xf32> to vector<1x1x4xf32>
    %12 = vector.broadcast %11 : vector<1x1x4xf32> to vector<1x8x4xf32>
    %c0_7 = arith.constant 0 : index
    %c0_8 = arith.constant 0 : index
    %c0_9 = arith.constant 0 : index
    %13 = vector.load %arg4[%c0_7, %c0_8, %c0_9] : memref<1x8x4xf32, #tpu.memory_space<vmem>>, vector<1x8x4xf32>
    tpu.vector_store %arg4[%c0_7, %c0_8, %c0_9], %12 {strides = array<i32>} : memref<1x8x4xf32, #tpu.memory_space<vmem>>, vector<1x8x4xf32>,
    %14 = vector.shape_cast %9 : vector<1x4xf32> to vector<1x1x4xf32>
    %15 = vector.shape_cast %14 : vector<1x1x4xf32> to vector<1x1x4xf32>
    %16 = vector.broadcast %15 : vector<1x1x4xf32> to vector<1x8x4xf32>
    %c0_10 = arith.constant 0 : index
    %c0_11 = arith.constant 0 : index
    %c0_12 = arith.constant 0 : index
    %17 = vector.load %arg5[%c0_10, %c0_11, %c0_12] : memref<1x8x4xf32, #tpu.memory_space<vmem>>, vector<1x8x4xf32>
    tpu.vector_store %arg5[%c0_10, %c0_11, %c0_12], %16 {strides = array<i32>} : memref<1x8x4xf32, #tpu.memory_space<vmem>>, vector<1x8x4xf32>,
    return
  }
  func.func @transform_0(%arg0: i32) -> (i32, i32) {
    %c0_i32 = arith.constant 0 : i32
    %c0_i32_0 = arith.constant 0 : i32
    return %arg0, %c0_i32 : i32, i32
  }
  func.func @transform_1(%arg0: i32) -> (i32, i32) {
    %c0_i32 = arith.constant 0 : i32
    %c0_i32_0 = arith.constant 0 : i32
    %c0_i32_1 = arith.constant 0 : i32
    return %c0_i32, %c0_i32_0 : i32, i32
  }
  func.func @transform_2(%arg0: i32) -> (i32, i32) {
    %c0_i32 = arith.constant 0 : i32
    %c0_i32_0 = arith.constant 0 : i32
    return %arg0, %c0_i32 : i32, i32
  }
  func.func @transform_3(%arg0: i32) -> (i32, i32, i32) {
    %c0_i32 = arith.constant 0 : i32
    %c0_i32_0 = arith.constant 0 : i32
    %c0_i32_1 = arith.constant 0 : i32
    return %arg0, %c0_i32, %c0_i32_0 : i32, i32, i32
  }
  func.func @transform_4(%arg0: i32) -> (i32, i32, i32) {
    %c0_i32 = arith.constant 0 : i32
    %c0_i32_0 = arith.constant 0 : i32
    %c0_i32_1 = arith.constant 0 : i32
    return %arg0, %c0_i32, %c0_i32_0 : i32, i32, i32
  }
}

module attributes {stable_mosaic.version = 11 : i64} {
  func.func @_bn_act_kernel(%arg0: i32, %arg1: memref<32x128xbf16, #tpu.memory_space<vmem>>, %arg2: memref<1x128xf32, #tpu.memory_space<vmem>>, %arg3: memref<1x128xf32, #tpu.memory_space<vmem>>, %arg4: memref<32x128xbf16, #tpu.memory_space<vmem>>) attributes {dimension_semantics = [#tpu.dimension_semantics<parallel>], iteration_bounds = array<i64: 1>, scalar_prefetch = 0 : i64, scratch_operands = 0 : i64, tpu.core_type = #tpu.core_type<tc>, window_params = [{transform_indices = @transform_0, window_bounds = array<i64: 32, 128>}, {pipeline_mode = #tpu.pipeline_mode<synchronous>, transform_indices = @transform_1, window_bounds = array<i64: 1, 128>}, {pipeline_mode = #tpu.pipeline_mode<synchronous>, transform_indices = @transform_2, window_bounds = array<i64: 1, 128>}, {transform_indices = @transform_3, window_bounds = array<i64: 32, 128>}]} {
    %c0 = arith.constant 0 : index
    %c0_0 = arith.constant 0 : index
    %0 = vector.load %arg1[%c0, %c0_0] : memref<32x128xbf16, #tpu.memory_space<vmem>>, vector<32x128xbf16>
    %1 = arith.extf %0 : vector<32x128xbf16> to vector<32x128xf32>
    %c0_1 = arith.constant 0 : index
    %c0_2 = arith.constant 0 : index
    %2 = vector.load %arg2[%c0_1, %c0_2] : memref<1x128xf32, #tpu.memory_space<vmem>>, vector<1x128xf32>
    %3 = vector.broadcast %2 : vector<1x128xf32> to vector<32x128xf32>
    %4 = arith.mulf %1, %3 : vector<32x128xf32>
    %c0_3 = arith.constant 0 : index
    %c0_4 = arith.constant 0 : index
    %5 = vector.load %arg3[%c0_3, %c0_4] : memref<1x128xf32, #tpu.memory_space<vmem>>, vector<1x128xf32>
    %6 = vector.broadcast %5 : vector<1x128xf32> to vector<32x128xf32>
    %7 = arith.addf %4, %6 : vector<32x128xf32>
    %cst = arith.constant 0.000000e+00 : f32
    %8 = vector.broadcast %cst : f32 to vector<32x128xf32>
    %9 = arith.maximumf %7, %8 : vector<32x128xf32>
    %10 = arith.truncf %9 : vector<32x128xf32> to vector<32x128xbf16>
    %c0_5 = arith.constant 0 : index
    %c0_6 = arith.constant 0 : index
    %11 = vector.load %arg4[%c0_5, %c0_6] : memref<32x128xbf16, #tpu.memory_space<vmem>>, vector<32x128xbf16>
    tpu.vector_store %arg4[%c0_5, %c0_6], %10 {strides = array<i32>} : memref<32x128xbf16, #tpu.memory_space<vmem>>, vector<32x128xbf16>,
    return
  }
  func.func @transform_0(%arg0: i32) -> (i32, i32) {
    %c0_i32 = arith.constant 0 : i32
    %c0_i32_0 = arith.constant 0 : i32
    return %arg0, %c0_i32 : i32, i32
  }
  func.func @transform_1(%arg0: i32) -> (i32, i32) {
    %c0_i32 = arith.constant 0 : i32
    %c0_i32_0 = arith.constant 0 : i32
    %c0_i32_1 = arith.constant 0 : i32
    return %c0_i32, %c0_i32_0 : i32, i32
  }
  func.func @transform_2(%arg0: i32) -> (i32, i32) {
    %c0_i32 = arith.constant 0 : i32
    %c0_i32_0 = arith.constant 0 : i32
    %c0_i32_1 = arith.constant 0 : i32
    return %c0_i32, %c0_i32_0 : i32, i32
  }
  func.func @transform_3(%arg0: i32) -> (i32, i32) {
    %c0_i32 = arith.constant 0 : i32
    %c0_i32_0 = arith.constant 0 : i32
    return %arg0, %c0_i32 : i32, i32
  }
}

module attributes {stable_mosaic.version = 11 : i64} {
  func.func @_bn_res_act_kernel(%arg0: i32, %arg1: memref<32x128xbf16, #tpu.memory_space<vmem>>, %arg2: memref<1x128xf32, #tpu.memory_space<vmem>>, %arg3: memref<1x128xf32, #tpu.memory_space<vmem>>, %arg4: memref<32x128xbf16, #tpu.memory_space<vmem>>, %arg5: memref<32x128xf32, #tpu.memory_space<vmem>>) attributes {dimension_semantics = [#tpu.dimension_semantics<parallel>], iteration_bounds = array<i64: 1>, scalar_prefetch = 0 : i64, scratch_operands = 0 : i64, tpu.core_type = #tpu.core_type<tc>, window_params = [{transform_indices = @transform_0, window_bounds = array<i64: 32, 128>}, {pipeline_mode = #tpu.pipeline_mode<synchronous>, transform_indices = @transform_1, window_bounds = array<i64: 1, 128>}, {pipeline_mode = #tpu.pipeline_mode<synchronous>, transform_indices = @transform_2, window_bounds = array<i64: 1, 128>}, {transform_indices = @transform_3, window_bounds = array<i64: 32, 128>}, {transform_indices = @transform_4, window_bounds = array<i64: 32, 128>}]} {
    %c0 = arith.constant 0 : index
    %c0_0 = arith.constant 0 : index
    %0 = vector.load %arg1[%c0, %c0_0] : memref<32x128xbf16, #tpu.memory_space<vmem>>, vector<32x128xbf16>
    %1 = arith.extf %0 : vector<32x128xbf16> to vector<32x128xf32>
    %c0_1 = arith.constant 0 : index
    %c0_2 = arith.constant 0 : index
    %2 = vector.load %arg2[%c0_1, %c0_2] : memref<1x128xf32, #tpu.memory_space<vmem>>, vector<1x128xf32>
    %3 = vector.broadcast %2 : vector<1x128xf32> to vector<32x128xf32>
    %4 = arith.mulf %1, %3 : vector<32x128xf32>
    %c0_3 = arith.constant 0 : index
    %c0_4 = arith.constant 0 : index
    %5 = vector.load %arg3[%c0_3, %c0_4] : memref<1x128xf32, #tpu.memory_space<vmem>>, vector<1x128xf32>
    %6 = vector.broadcast %5 : vector<1x128xf32> to vector<32x128xf32>
    %7 = arith.addf %4, %6 : vector<32x128xf32>
    %c0_5 = arith.constant 0 : index
    %c0_6 = arith.constant 0 : index
    %8 = vector.load %arg4[%c0_5, %c0_6] : memref<32x128xbf16, #tpu.memory_space<vmem>>, vector<32x128xbf16>
    %9 = arith.extf %8 : vector<32x128xbf16> to vector<32x128xf32>
    %10 = arith.addf %7, %9 : vector<32x128xf32>
    %cst = arith.constant 0.000000e+00 : f32
    %11 = vector.broadcast %cst : f32 to vector<32x128xf32>
    %12 = arith.maximumf %10, %11 : vector<32x128xf32>
    %c0_7 = arith.constant 0 : index
    %c0_8 = arith.constant 0 : index
    %13 = vector.load %arg5[%c0_7, %c0_8] : memref<32x128xf32, #tpu.memory_space<vmem>>, vector<32x128xf32>
    tpu.vector_store %arg5[%c0_7, %c0_8], %12 {strides = array<i32>} : memref<32x128xf32, #tpu.memory_space<vmem>>, vector<32x128xf32>,
    return
  }
  func.func @transform_0(%arg0: i32) -> (i32, i32) {
    %c0_i32 = arith.constant 0 : i32
    %c0_i32_0 = arith.constant 0 : i32
    return %arg0, %c0_i32 : i32, i32
  }
  func.func @transform_1(%arg0: i32) -> (i32, i32) {
    %c0_i32 = arith.constant 0 : i32
    %c0_i32_0 = arith.constant 0 : i32
    %c0_i32_1 = arith.constant 0 : i32
    return %c0_i32, %c0_i32_0 : i32, i32
  }
  func.func @transform_2(%arg0: i32) -> (i32, i32) {
    %c0_i32 = arith.constant 0 : i32
    %c0_i32_0 = arith.constant 0 : i32
    %c0_i32_1 = arith.constant 0 : i32
    return %c0_i32, %c0_i32_0 : i32, i32
  }
  func.func @transform_3(%arg0: i32) -> (i32, i32) {
    %c0_i32 = arith.constant 0 : i32
    %c0_i32_0 = arith.constant 0 : i32
    return %arg0, %c0_i32 : i32, i32
  }
  func.func @transform_4(%arg0: i32) -> (i32, i32) {
    %c0_i32 = arith.constant 0 : i32
    %c0_i32_0 = arith.constant 0 : i32
    return %arg0, %c0_i32 : i32, i32
  }
}

</mosaic_0001>

<bundles_post_ra>
// kernel: mul.9
= control target key start
LH: loop header
LB: loop body
LE: loop exit
PB: predicated region body
PF: predicated region fallthrough
CT: control target
= control target key end

     0   :  { %s34_s0 = inlined_call_operand.vmem [shape: f32[4], index: 0, kind: input, shape index: {}]   ;;  %s35_s1 = inlined_call_operand.vmem [shape: f32[4], index: 1, kind: input, shape index: {}]   ;;  %s36_s2 = inlined_call_operand.vmem [shape: f32[4], index: 2, kind: output, shape index: {}]  }
   0x1   :  { %v3_v0 = vld [vmem:[%s34_s0] sm:$0x1] }
   0x2   :  { %v4_v1 = vld [vmem:[%s35_s1] sm:$0x1] }
   0x3   :  { %v7_v2 = vmul.f32 %v4_v1, %v3_v0 }
   0x5   :  { %9 = vst [vmem:[%s36_s2] sm:$0x1] %v7_v2 }

// kernel: _basic_block_forward.4
= control target key start
LH: loop header
LB: loop body
LE: loop exit
PB: predicated region body
PF: predicated region fallthrough
CT: control target
= control target key end

     0   :  { %10 = vsyncpa [#allocation3], 0  ;;  %s4444_s0 = inlined_call_operand.hbm [shape: bf16[1024,108], index: 0, kind: input, shape index: {}]   ;;  %s4445_s1 = inlined_call_operand.hbm [shape: bf16[108,4], index: 1, kind: input, shape index: {}]   ;;  %s4446_s2 = inlined_call_operand.hbm [shape: bf16[1024,4], index: 2, kind: output, shape index: {0}]   ;;  %s4447_s3 = inlined_call_operand.hbm [shape: f32[1,8,4], index: 3, kind: output, shape index: {1}]   ;;  %s4448_s4 = inlined_call_operand.hbm [shape: f32[1,8,4], index: 4, kind: output, shape index: {2}]  }
   0x1   :  { %11 = vsyncpa [#allocation6], 0 }
   0x2   :  { %12 = vsyncpa [#allocation4], 0 }
   0x3   :  { %13 = vsyncpa [#allocation9], 0  ;;  %s3445_s15 = smov [#allocation2]   ;;  %s3327_s19 = scalar_lea.hbm %s4444_s0, 8192 }
   0x4   :  { %s19_s16 = sshll.u32 %s3445_s15, 4  ;;  %p3328_p0 = scmp.ne.s32.totalorder %s4444_s0, %s3327_s19  ;;  %s20_s16 = int_to_ptr.vmem [resolvable:$true] %s19_s16 }
   0x5   :  { %p3331_p1 = scmp.lt.u32.totalorder %s3327_s19, %s4444_s0 }
   0x7   :  { %p3333_p2 = pnand %p3331_p1, %p3328_p0 }
   0x9   :  { %3336 = shalt.err (!%p3333_p2)
}
   0xa   :  { %s3337_s24 = scalar_lea.vmem %s20_s16, 8192  ;;  %p3342_p4 = scmp.lt.s32.totalorder %s20_s16, %s20_s16 }
   0xb   :  { %p3338_p3 = scmp.ne.s32.totalorder %s20_s16, %s3337_s24  ;;  %p3343_p5 = scmp.lt.s32.totalorder %s3337_s24, %s3337_s24 }
   0xd   :  { %p3344_p6 = por %p3343_p5, %p3342_p4 }
   0xf   :  { %p3345_p7 = pnand %p3344_p6, %p3338_p3 }
  0x11   :  { %3348 = shalt.err (!%p3345_p7)
}
  0x12   :  { %s3446_s25 = smov 64   ;;  %s3447_s26 = smov 4  }
  0x13   :  { %25 = dma.hbm_to_vmem [thread:$0]  %s4444_s0, 8192, %s20_s16, [#allocation3], %s3446_s25, %s3446_s25, %s3447_s26  }
  0x14   :  { %s3448_s29 = smov [#allocation5]   ;;  %s3349_s7 = scalar_lea.hbm %s4445_s1, 896 }
  0x15   :  { %s31_s30 = sshll.u32 %s3448_s29, 4  ;;  %p3350_p8 = scmp.ne.s32.totalorder %s4445_s1, %s3349_s7  ;;  %s32_s30 = int_to_ptr.vmem [resolvable:$true] %s31_s30 }
  0x16   :  { %p3353_p9 = scmp.lt.u32.totalorder %s3349_s7, %s4445_s1 }
  0x18   :  { %p3355_p10 = pnand %p3353_p9, %p3350_p8 }
  0x1a   :  { %3358 = shalt.err (!%p3355_p10)
}
  0x1b   :  { %s3359_s12 = scalar_lea.vmem %s32_s30, 896  ;;  %p3364_p12 = scmp.lt.s32.totalorder %s32_s30, %s32_s30 }
  0x1c   :  { %p3360_p11 = scmp.ne.s32.totalorder %s32_s30, %s3359_s12  ;;  %p3365_p13 = scmp.lt.s32.totalorder %s3359_s12, %s3359_s12 }
  0x1e   :  { %p3366_p0 = por %p3365_p13, %p3364_p12 }
  0x20   :  { %p3367_p1 = pnand %p3366_p0, %p3360_p11 }
  0x22   :  { %3370 = shalt.err (!%p3367_p1)
}
  0x23   :  { %37 = dma.hbm_to_vmem [thread:$0]  %s4445_s1, 896, %s32_s30, [#allocation6], %s3446_s25, %s3446_s25, %s3447_s26  }
  0x24   :  { %3437 = dma.done.wait [#allocation3], 8192  }
  0x25   :  { %3438 = vsyncadd [#allocation3], 4294959104 }
  0x26   :  { %3439 = dma.done.wait [#allocation6], 896  }
  0x27   :  { %3440 = vsyncadd [#allocation6], 4294966400  ;;  %v3256_v0 = vld [vmem:[#allocation5] sm:$0xff]   ;;  %v3257_v1 = vld [vmem:[#allocation5 + $0x8] sm:$0xff]   ;;  %vm548_vm0 = vcmask 883712   ;;  %vm741_vm1 = vcmask 1045504  }
  0x28   :  { %3091 = vmatprep.subr.bf16.mxu0 %v3256_v0  ;;  %3233 = vmatprep.subr.bf16.mxu1 %v3256_v0  ;;  %v3258_v2 = vld [vmem:[#allocation5 + $0x10] sm:$0xff]   ;;  %v3263_v3 = vld [vmem:[#allocation2] sm:$0xff]   ;;  %v3259_v4 = vld [vmem:[#allocation5 + $0x18] sm:$0xff]   ;;  %vm1802_vm2 = vcmask 27648   ;;  %vm1931_vm3 = vcmask 31744   ;;  %s3449_s1 = smov [#allocation7]  }
  0x29   :  { %3092 = vmatpush3.bf16.msra.mxu0 %v3256_v0  ;;  %3240 = vmatpush3.bf16.msra.mxu1 %v3256_v0  ;;  %v3260_v5 = vld [vmem:[#allocation5 + $0x20] sm:$0xff]   ;;  %v3261_v6 = vld [vmem:[#allocation5 + $0x28] sm:$0xff]   ;;  %v3262_v7 = vld [vmem:[#allocation5 + $0x30] sm:$0x3f]   ;;  %s2589_s14 = sshll.u32 %s3449_s1, 4  ;;  %s2590_s14 = int_to_ptr.vmem [resolvable:$true] %s2589_s14 }
  0x2a   :  { %3093 = vmatprep.subr.bf16.mxu0 %v3257_v1  ;;  %3234 = vmatprep.subr.bf16.mxu1 %v3257_v1  ;;  %v743_v8 = vsel %vm741_vm1, %v3262_v7, 0  ;;  %v3264_v9 = vld [vmem:[#allocation2 + $0x8] sm:$0xff]   ;;  %v3265_v10 = vld [vmem:[#allocation2 + $0x10] sm:$0xff]   ;;  %v3266_v11 = vld [vmem:[#allocation2 + $0x18] sm:$0xff]   ;;  %s3371_s15 = scalar_lea.vmem %s2590_s14, 8192  ;;  %p3376_p3 = scmp.lt.s32.totalorder %s2590_s14, %s2590_s14 }
  0x2b   :  { %3105 = vmatprep.mubr.msk.bf16.mxu0 %vm548_vm0, %v3263_v3  ;;  %v3267_v12 = vld [vmem:[#allocation2 + $0x20] sm:$0xff]   ;;  %v3296_v14 = vld [vmem:[#allocation2 + $0x108] sm:$0xff]   ;;  %v3297_v15 = vld [vmem:[#allocation2 + $0x110] sm:$0xff]   ;;  %p3372_p2 = scmp.ne.s32.totalorder %s2590_s14, %s3371_s15  ;;  %p3377_p4 = scmp.lt.s32.totalorder %s3371_s15, %s3371_s15 }
  0x2c   :  { %v3295_v13 = vld [vmem:[#allocation2 + $0x100] sm:$0xff]   ;;  %v3268_v16 = vld [vmem:[#allocation2 + $0x28] sm:$0xff]   ;;  %v3269_v17 = vld [vmem:[#allocation2 + $0x30] sm:$0xff]  }
  0x2d   :  { %3094 = vmatpush3.bf16.msra.mxu0 %v3257_v1  ;;  %3241 = vmatpush3.bf16.msra.mxu1 %v3257_v1  ;;  %v3298_v18 = vld [vmem:[#allocation2 + $0x118] sm:$0xff]   ;;  %v3299_v19 = vld [vmem:[#allocation2 + $0x120] sm:$0xff]   ;;  %v3300_v22 = vld [vmem:[#allocation2 + $0x128] sm:$0xff]   ;;  %p3378_p5 = por %p3377_p4, %p3376_p3 }
  0x2e   :  { %3095 = vmatprep.subr.bf16.mxu0 %v3258_v2  ;;  %3235 = vmatprep.subr.bf16.mxu1 %v3258_v2  ;;  %v3270_v20 = vld [vmem:[#allocation2 + $0x38] sm:$0xff]   ;;  %v3271_v21 = vld [vmem:[#allocation2 + $0x40] sm:$0xff]   ;;  %v3301_v23 = vld [vmem:[#allocation2 + $0x130] sm:$0xff]  }
  0x2f   :  { %3169 = vmatprep.mubr.msk.bf16.mxu1 %vm548_vm0, %v3295_v13  ;;  %v3272_v24 = vld [vmem:[#allocation2 + $0x48] sm:$0xff]   ;;  %v3273_v25 = vld [vmem:[#allocation2 + $0x50] sm:$0xff]   ;;  %v3302_v26 = vld [vmem:[#allocation2 + $0x138] sm:$0xff]   ;;  %p3379_p6 = pnand %p3378_p5, %p3372_p2 }
  0x30   :  { %v3303_v27 = vld [vmem:[#allocation2 + $0x140] sm:$0xff]   ;;  %v3274_v28 = vld [vmem:[#allocation2 + $0x58] sm:$0xff]   ;;  %v3304_v30 = vld [vmem:[#allocation2 + $0x148] sm:$0xff]  }
  0x31   :  { %3096 = vmatpush3.bf16.msra.mxu0 %v3258_v2  ;;  %3242 = vmatpush3.bf16.msra.mxu1 %v3258_v2  ;;  %v3275_v29 = vld [vmem:[#allocation2 + $0x60] sm:$0xff]   ;;  %v3305_v31 = vld [vmem:[#allocation2 + $0x150] sm:$0xff]   ;;  %v3276_v32 = vld [vmem:[#allocation2 + $0x68] sm:$0xff]  }
  0x32   :  { %3097 = vmatprep.subr.bf16.mxu0 %v3259_v4  ;;  %3236 = vmatprep.subr.bf16.mxu1 %v3259_v4  ;;  %v3277_v33 = vld [vmem:[#allocation2 + $0x70] sm:$0xff]   ;;  %v3306_v34 = vld [vmem:[#allocation2 + $0x158] sm:$0xff]   ;;  %v3307_v35 = vld [vmem:[#allocation2 + $0x160] sm:$0xff]  }
  0x33   :  { %v3278_v36 = vld [vmem:[#allocation2 + $0x78] sm:$0xff]   ;;  %v3279_v37 = vld [vmem:[#allocation2 + $0x80] sm:$0xff]   ;;  %v3308_v38 = vld [vmem:[#allocation2 + $0x168] sm:$0xff]  }
  0x34   :  { %v3309_v39 = vld [vmem:[#allocation2 + $0x170] sm:$0xff]   ;;  %v3280_v40 = vld [vmem:[#allocation2 + $0x88] sm:$0xff]   ;;  %v3310_v42 = vld [vmem:[#allocation2 + $0x178] sm:$0xff]  }
  0x35   :  { %3098 = vmatpush3.bf16.msra.mxu0 %v3259_v4  ;;  %3243 = vmatpush3.bf16.msra.mxu1 %v3259_v4  ;;  %v3281_v41 = vld [vmem:[#allocation2 + $0x90] sm:$0xff]   ;;  %v3311_v43 = vld [vmem:[#allocation2 + $0x180] sm:$0xff]   ;;  %v3282_v44 = vld [vmem:[#allocation2 + $0x98] sm:$0xff]  }
  0x36   :  { %3099 = vmatprep.subr.bf16.mxu0 %v3260_v5  ;;  %3237 = vmatprep.subr.bf16.mxu1 %v3260_v5  ;;  %v3283_v45 = vld [vmem:[#allocation2 + $0xa0] sm:$0xff]   ;;  %v3312_v46 = vld [vmem:[#allocation2 + $0x188] sm:$0xff]   ;;  %v3313_v47 = vld [vmem:[#allocation2 + $0x190] sm:$0xff]  }
  0x37   :  { %v3284_v48 = vld [vmem:[#allocation2 + $0xa8] sm:$0xff]   ;;  %v3285_v49 = vld [vmem:[#allocation2 + $0xb0] sm:$0xff]   ;;  %v3314_v50 = vld [vmem:[#allocation2 + $0x198] sm:$0xff]  }
  0x38   :  { %v3315_v51 = vld [vmem:[#allocation2 + $0x1a0] sm:$0xff]   ;;  %v3286_v52 = vld [vmem:[#allocation2 + $0xb8] sm:$0xff]   ;;  %v3316_v54 = vld [vmem:[#allocation2 + $0x1a8] sm:$0xff]  }
  0x39   :  { %3100 = vmatpush3.bf16.msra.mxu0 %v3260_v5  ;;  %3244 = vmatpush3.bf16.msra.mxu1 %v3260_v5  ;;  %v3287_v53 = vld [vmem:[#allocation2 + $0xc0] sm:$0xff]   ;;  %v3317_v55 = vld [vmem:[#allocation2 + $0x1b0] sm:$0xff]   ;;  %v3288_v56 = vld [vmem:[#allocation2 + $0xc8] sm:$0xff]  }
  0x3a   :  { %3101 = vmatprep.subr.bf16.mxu0 %v3261_v6  ;;  %3238 = vmatprep.subr.bf16.mxu1 %v3261_v6  ;;  %v3289_v57 = vld [vmem:[#allocation2 + $0xd0] sm:$0xff]   ;;  %v3318_v58 = vld [vmem:[#allocation2 + $0x1b8] sm:$0xff]   ;;  %v3319_v59 = vld [vmem:[#allocation2 + $0x1c0] sm:$0xff]  }
  0x3b   :  { %v3290_v60 = vld [vmem:[#allocation2 + $0xd8] sm:$0xff]   ;;  %v3291_v61 = vld [vmem:[#allocation2 + $0xe0] sm:$0xff]   ;;  %v3320_v62 = vld [vmem:[#allocation2 + $0x1c8] sm:$0xff]  }
  0x3c   :  { %v3321_v63 = vld [vmem:[#allocation2 + $0x1d0] sm:$0xff]   ;;  %v3292_v0 = vld [vmem:[#allocation2 + $0xe8] sm:$0xff]   ;;  %v3322_v2 = vld [vmem:[#allocation2 + $0x1d8] sm:$0xff]  }
  0x3d   :  { %3102 = vmatpush3.bf16.msra.mxu0 %v3261_v6  ;;  %3245 = vmatpush3.bf16.msra.mxu1 %v3261_v6  ;;  %v3293_v1 = vld [vmem:[#allocation2 + $0xf0] sm:$0xff]   ;;  %v3323_v3 = vld [vmem:[#allocation2 + $0x1e0] sm:$0xff]   ;;  %v3294_v4 = vld [vmem:[#allocation2 + $0xf8] sm:$0xff]  }
  0x3e   :  { %3247 = vmatprep.subr.msk.bf16.mxu0 %vm741_vm1, %v3262_v7  ;;  %3248 = vmatprep.subr.msk.bf16.mxu1 %vm741_vm1, %v3262_v7  ;;  %v3324_v5 = vld [vmem:[#allocation2 + $0x1e8] sm:$0xff]   ;;  %v3325_v6 = vld [vmem:[#allocation2 + $0x1f0] sm:$0xff]   ;;  %v3326_v7 = vld [vmem:[#allocation2 + $0x1f8] sm:$0xff]  }
  0x41   :  { %3104 = vmatpush3.bf16.msra.mxu0 %v743_v8  ;;  %3246 = vmatpush3.bf16.msra.mxu1 %v743_v8 }
  0x44   :  { %3106 = vmatmul.mubr.msk.bf16.vlgmr.msra.gmra.mrb[0].mxu0 %vm548_vm0, %v3264_v9  ;;  %3170 = vmatmul.mubr.msk.bf16.vlgmr.msra.gmra.mrb[0].mxu1 %vm548_vm0, %v3296_v14 }
  0x45   :  { %3109 = vmatprep.mubr.msk.bf16.mxu0 %vm548_vm0, %v3265_v10  ;;  %3173 = vmatprep.mubr.msk.bf16.mxu1 %vm548_vm0, %v3297_v15 }
  0x4c   :  { %3110 = vmatmul.mubr.msk.bf16.gmra.mrb[4].mxu0 %vm548_vm0, %v3266_v11  ;;  %3174 = vmatmul.mubr.msk.bf16.gmra.mrb[4].mxu1 %vm548_vm0, %v3298_v18 }
  0x4d   :  { %3113 = vmatprep.mubr.msk.bf16.mxu0 %vm548_vm0, %v3267_v12  ;;  %3177 = vmatprep.mubr.msk.bf16.mxu1 %vm548_vm0, %v3299_v19 }
  0x54   :  { %3114 = vmatmul.mubr.msk.bf16.gmra.mrb[8].mxu0 %vm548_vm0, %v3268_v16  ;;  %3178 = vmatmul.mubr.msk.bf16.gmra.mrb[8].mxu1 %vm548_vm0, %v3300_v22 }
  0x55   :  { %3117 = vmatprep.mubr.msk.bf16.mxu0 %vm548_vm0, %v3269_v17  ;;  %3181 = vmatprep.mubr.msk.bf16.mxu1 %vm548_vm0, %v3301_v23 }
  0x5c   :  { %3118 = vmatmul.mubr.msk.bf16.gmra.mrb[12].mxu0 %vm548_vm0, %v3270_v20  ;;  %3182 = vmatmul.mubr.msk.bf16.gmra.mrb[12].mxu1 %vm548_vm0, %v3302_v26 }
  0x5d   :  { %3121 = vmatprep.mubr.msk.bf16.mxu0 %vm548_vm0, %v3271_v21  ;;  %3185 = vmatprep.mubr.msk.bf16.mxu1 %vm548_vm0, %v3303_v27 }
  0x64   :  { %3122 = vmatmul.mubr.msk.bf16.gmra.mrb[16].mxu0 %vm548_vm0, %v3272_v24  ;;  %3186 = vmatmul.mubr.msk.bf16.gmra.mrb[16].mxu1 %vm548_vm0, %v3304_v30 }
  0x65   :  { %3125 = vmatprep.mubr.msk.bf16.mxu0 %vm548_vm0, %v3273_v25  ;;  %3189 = vmatprep.mubr.msk.bf16.mxu1 %vm548_vm0, %v3305_v31 }
  0x6c   :  { %3126 = vmatmul.mubr.msk.bf16.gmra.mrb[20].mxu0 %vm548_vm0, %v3274_v28  ;;  %3190 = vmatmul.mubr.msk.bf16.gmra.mrb[20].mxu1 %vm548_vm0, %v3306_v34 }
  0x6d   :  { %3129 = vmatprep.mubr.msk.bf16.mxu0 %vm548_vm0, %v3275_v29  ;;  %3193 = vmatprep.mubr.msk.bf16.mxu1 %vm548_vm0, %v3307_v35 }
  0x74   :  { %3130 = vmatmul.mubr.msk.bf16.gmra.mrb[24].mxu0 %vm548_vm0, %v3276_v32  ;;  %3194 = vmatmul.mubr.msk.bf16.gmra.mrb[24].mxu1 %vm548_vm0, %v3308_v38 }
  0x75   :  { %3133 = vmatprep.mubr.msk.bf16.mxu0 %vm548_vm0, %v3277_v33  ;;  %3197 = vmatprep.mubr.msk.bf16.mxu1 %vm548_vm0, %v3309_v39 }
  0x7c   :  { %3134 = vmatmul.mubr.msk.bf16.gmra.mrb[28].mxu0 %vm548_vm0, %v3278_v36  ;;  %3198 = vmatmul.mubr.msk.bf16.gmra.mrb[28].mxu1 %vm548_vm0, %v3310_v42 }
  0x7d   :  { %3137 = vmatprep.mubr.msk.bf16.mxu0 %vm548_vm0, %v3279_v37  ;;  %3201 = vmatprep.mubr.msk.bf16.mxu1 %vm548_vm0, %v3311_v43 }
  0x84   :  { %3138 = vmatmul.mubr.msk.bf16.gmra.mrb[32].mxu0 %vm548_vm0, %v3280_v40  ;;  %3202 = vmatmul.mubr.msk.bf16.gmra.mrb[32].mxu1 %vm548_vm0, %v3312_v46 }
  0x85   :  { %3141 = vmatprep.mubr.msk.bf16.mxu0 %vm548_vm0, %v3281_v41  ;;  %3205 = vmatprep.mubr.msk.bf16.mxu1 %vm548_vm0, %v3313_v47 }
  0x8c   :  { %3142 = vmatmul.mubr.msk.bf16.gmra.mrb[36].mxu0 %vm548_vm0, %v3282_v44  ;;  %3206 = vmatmul.mubr.msk.bf16.gmra.mrb[36].mxu1 %vm548_vm0, %v3314_v50 }
  0x8d   :  { %3145 = vmatprep.mubr.msk.bf16.mxu0 %vm548_vm0, %v3283_v45  ;;  %3209 = vmatprep.mubr.msk.bf16.mxu1 %vm548_vm0, %v3315_v51 }
  0x94   :  { %3146 = vmatmul.mubr.msk.bf16.gmra.mrb[40].mxu0 %vm548_vm0, %v3284_v48  ;;  %3210 = vmatmul.mubr.msk.bf16.gmra.mrb[40].mxu1 %vm548_vm0, %v3316_v54 }
  0x95   :  { %3149 = vmatprep.mubr.msk.bf16.mxu0 %vm548_vm0, %v3285_v49  ;;  %3213 = vmatprep.mubr.msk.bf16.mxu1 %vm548_vm0, %v3317_v55 }
  0x9c   :  { %3150 = vmatmul.mubr.msk.bf16.gmra.mrb[44].mxu0 %vm548_vm0, %v3286_v52  ;;  %3214 = vmatmul.mubr.msk.bf16.gmra.mrb[44].mxu1 %vm548_vm0, %v3318_v58 }
  0x9d   :  { %3153 = vmatprep.mubr.msk.bf16.mxu0 %vm548_vm0, %v3287_v53  ;;  %3217 = vmatprep.mubr.msk.bf16.mxu1 %vm548_vm0, %v3319_v59 }
  0xa4   :  { %3154 = vmatmul.mubr.msk.bf16.gmra.mrb[48].mxu0 %vm548_vm0, %v3288_v56  ;;  %3218 = vmatmul.mubr.msk.bf16.gmra.mrb[48].mxu1 %vm548_vm0, %v3320_v62 }
  0xa5   :  { %3157 = vmatprep.mubr.msk.bf16.mxu0 %vm548_vm0, %v3289_v57  ;;  %3221 = vmatprep.mubr.msk.bf16.mxu1 %vm548_vm0, %v3321_v63 }
  0xac   :  { %3158 = vmatmul.mubr.msk.bf16.gmra.mrb[52].mxu0 %vm548_vm0, %v3290_v60  ;;  %3222 = vmatmul.mubr.msk.bf16.gmra.mrb[52].mxu1 %vm548_vm0, %v3322_v2 }
  0xad   :  { %3161 = vmatprep.mubr.msk.bf16.mxu0 %vm548_vm0, %v3291_v61  ;;  %3225 = vmatprep.mubr.msk.bf16.mxu1 %vm548_vm0, %v3323_v3 }
  0xb4   :  { %3162 = vmatmul.mubr.msk.bf16.gmra.mrb[56].mxu0 %vm548_vm0, %v3292_v0  ;;  %3226 = vmatmul.mubr.msk.bf16.gmra.mrb[56].mxu1 %vm548_vm0, %v3324_v5 }
  0xb5   :  { %3165 = vmatprep.mubr.msk.bf16.mxu0 %vm548_vm0, %v3293_v1  ;;  %3229 = vmatprep.mubr.msk.bf16.mxu1 %vm548_vm0, %v3325_v6 }
  0xbc   :  { %3166 = vmatmul.mubr.msk.bf16.gmra.mrb[60].mxu0 %vm548_vm0, %v3294_v4  ;;  %3230 = vmatmul.mubr.msk.bf16.gmra.mrb[60].mxu1 %vm548_vm0, %v3326_v7 }
 0x117   :  { %v3107_v8 = vpop.f32.mrb[0].mxu0  ;;  %v3587_v47 = vpop.f32.mrb[0].mxu1 }
 0x118   :  { %v2894_v9 = vpack.c.bf16 %v3107_v8, %v3107_v8  ;;  %v779_v10 = vpop.f32.mrb[1].mxu0  ;;  %v2195_v14 = vmul.f32 %v3107_v8, %v3107_v8  ;;  %v1935_v22 = vsel %vm1931_vm3, %v3107_v8, 0.0  ;;  %v2958_v51 = vpack.c.bf16 %v3587_v47, %v3587_v47  ;;  %v3593_v52 = vpop.f32.mrb[1].mxu1 }
 0x119   :  { %v2892_v11 = vpack.c.bf16 %v779_v10, %v779_v10  ;;  %v2193_v12 = vmul.f32 %v779_v10, %v779_v10  ;;  %v3108_v13 = vpop.f32.mrb[2].mxu0  ;;  %v1932_v17 = vsel %vm1931_vm3, %v779_v10, 0.0  ;;  %v3596_v54 = vpop.f32.mrb[2].mxu1  ;;  %v2956_v58 = vpack.c.bf16 %v3593_v52, %v3593_v52 }
 0x11a   :  { %1805 = vst.msk [vmem:[#allocation7 + $0x8] sm:$0xf] %vm1802_vm2, %v2894_v9  ;;  %v2895_v15 = vpack.c.bf16 %v3108_v13, %v3108_v13  ;;  %v782_v16 = vpop.f32.mrb[3].mxu0  ;;  %v2196_v24 = vmul.f32 %v3108_v13, %v3108_v13  ;;  %v2324_v28 = vsel %vm1931_vm3, %v2195_v14, 0.0  ;;  %v1937_v29 = vsel %vm1931_vm3, %v3108_v13, 0.0  ;;  %v3603_v59 = vpop.f32.mrb[3].mxu1 }
 0x11b   :  { %1803 = vst.msk [vmem:[#allocation7] sm:$0xf] %vm1802_vm2, %v2892_v11  ;;  %v2893_v18 = vpack.c.bf16 %v782_v16, %v782_v16  ;;  %v1933_v19 = vsel %vm1931_vm3, %v782_v16, 0.0  ;;  %v2194_v20 = vmul.f32 %v782_v16, %v782_v16  ;;  %v2321_v23 = vsel %vm1931_vm3, %v2193_v12, 0.0  ;;  %1869 = vst.msk [vmem:[#allocation7 + $0x108] sm:$0xf] %vm1802_vm2, %v2958_v51 }
 0x11c   :  { %1806 = vst.msk [vmem:[#allocation7 + $0xc] sm:$0xf] %vm1802_vm2, %v2895_v15  ;;  %v1934_v21 = vadd.f32 %v1933_v19, %v1932_v17  ;;  %v2326_v35 = vsel %vm1931_vm3, %v2196_v24, 0.0  ;;  %v2959_v63 = vpack.c.bf16 %v3596_v54, %v3596_v54  ;;  %1867 = vst.msk [vmem:[#allocation7 + $0x100] sm:$0xf] %vm1802_vm2, %v2956_v58 }
 0x11d   :  { %1804 = vst.msk [vmem:[#allocation7 + $0x4] sm:$0xf] %vm1802_vm2, %v2893_v18  ;;  %v2322_v25 = vsel %vm1931_vm3, %v2194_v20, 0.0 }
 0x11e   :  { %v1936_v26 = vadd.f32 %v1935_v22, %v1934_v21  ;;  %v2323_v27 = vadd.f32 %v2322_v25, %v2321_v23  ;;  %1870 = vst.msk [vmem:[#allocation7 + $0x10c] sm:$0xf] %vm1802_vm2, %v2959_v63 }
 0x11f   :  { %v3111_v30 = vpop.f32.mrb[4].mxu0  ;;  %v3615_v16 = vpop.f32.mrb[4].mxu1 }
 0x120   :  { %v1938_v31 = vadd.f32 %v1937_v29, %v1936_v26  ;;  %v2325_v32 = vadd.f32 %v2324_v28, %v2323_v27  ;;  %v2898_v33 = vpack.c.bf16 %v3111_v30, %v3111_v30  ;;  %v795_v34 = vpop.f32.mrb[5].mxu0  ;;  %v2199_v44 = vmul.f32 %v3111_v30, %v3111_v30  ;;  %v3620_v21 = vpop.f32.mrb[5].mxu1 }
 0x121   :  { %v2896_v36 = vpack.c.bf16 %v795_v34, %v795_v34  ;;  %v1939_v37 = vsel %vm1931_vm3, %v795_v34, 0.0  ;;  %v2197_v38 = vmul.f32 %v795_v34, %v795_v34  ;;  %v3112_v39 = vpop.f32.mrb[6].mxu0  ;;  %v1943_v55 = vsel %vm1931_vm3, %v3111_v30, 0.0  ;;  %v3623_v24 = vpop.f32.mrb[6].mxu1 }
 0x122   :  { %v2327_v40 = vadd.f32 %v2326_v35, %v2325_v32  ;;  %1809 = vst.msk [vmem:[#allocation7 + $0x18] sm:$0xf] %vm1802_vm2, %v2898_v33  ;;  %v1940_v41 = vadd.f32 %v1939_v37, %v1938_v31  ;;  %v2899_v42 = vpack.c.bf16 %v3112_v39, %v3112_v39  ;;  %v798_v43 = vpop.f32.mrb[7].mxu0  ;;  %v2200_v56 = vmul.f32 %v3112_v39, %v3112_v39  ;;  %v3629_v29 = vpop.f32.mrb[7].mxu1 }
 0x123   :  { %1807 = vst.msk [vmem:[#allocation7 + $0x10] sm:$0xf] %vm1802_vm2, %v2896_v36  ;;  %v2328_v45 = vsel %vm1931_vm3, %v2197_v38, 0.0  ;;  %v2897_v46 = vpack.c.bf16 %v798_v43, %v798_v43  ;;  %v1941_v49 = vsel %vm1931_vm3, %v798_v43, 0.0  ;;  %v2198_v50 = vmul.f32 %v798_v43, %v798_v43 }
 0x124   :  { %v2329_v48 = vadd.f32 %v2328_v45, %v2327_v40  ;;  %1810 = vst.msk [vmem:[#allocation7 + $0x1c] sm:$0xf] %vm1802_vm2, %v2899_v42  ;;  %v1942_v53 = vadd.f32 %v1941_v49, %v1940_v41  ;;  %v2332_v0 = vsel %vm1931_vm3, %v2199_v44, 0.0  ;;  %v1945_v1 = vsel %vm1931_vm3, %v3112_v39, 0.0 }
 0x125   :  { %1808 = vst.msk [vmem:[#allocation7 + $0x14] sm:$0xf] %vm1802_vm2, %v2897_v46  ;;  %v2330_v57 = vsel %vm1931_vm3, %v2198_v50, 0.0  ;;  %v2334_v9 = vsel %vm1931_vm3, %v2200_v56, 0.0  ;;  %v2957_v28 = vpack.c.bf16 %v3603_v59, %v3603_v59  ;;  %v2962_v33 = vpack.c.bf16 %v3615_v16, %v3615_v16 }
 0x126   :  { %v1944_v60 = vadd.f32 %v1943_v55, %v1942_v53  ;;  %v2331_v61 = vadd.f32 %v2330_v57, %v2329_v48 }
 0x127   :  { %v3115_v62 = vpop.f32.mrb[8].mxu0  ;;  %1868 = vst.msk [vmem:[#allocation7 + $0x104] sm:$0xf] %vm1802_vm2, %v2957_v28  ;;  %1873 = vst.msk [vmem:[#allocation7 + $0x118] sm:$0xf] %vm1802_vm2, %v2962_v33  ;;  %v3641_v51 = vpop.f32.mrb[8].mxu1 }
 0x128   :  { %v2902_v2 = vpack.c.bf16 %v3115_v62, %v3115_v62  ;;  %v811_v3 = vpop.f32.mrb[9].mxu0  ;;  %v2333_v4 = vadd.f32 %v2332_v0, %v2331_v61  ;;  %v1946_v6 = vadd.f32 %v1945_v1, %v1944_v60  ;;  %v2203_v17 = vmul.f32 %v3115_v62, %v3115_v62  ;;  %v3646_v58 = vpop.f32.mrb[9].mxu1 }
 0x129   :  { %v2900_v5 = vpack.c.bf16 %v811_v3, %v811_v3  ;;  %v1947_v7 = vsel %vm1931_vm3, %v811_v3, 0.0  ;;  %v3116_v8 = vpop.f32.mrb[10].mxu0  ;;  %v2201_v10 = vmul.f32 %v811_v3, %v811_v3  ;;  %v1951_v25 = vsel %vm1931_vm3, %v3115_v62, 0.0  ;;  %v3649_v62 = vpop.f32.mrb[10].mxu1 }
 0x12a   :  { %1813 = vst.msk [vmem:[#allocation7 + $0x28] sm:$0xf] %vm1802_vm2, %v2902_v2  ;;  %v2903_v11 = vpack.c.bf16 %v3116_v8, %v3116_v8  ;;  %v814_v12 = vpop.f32.mrb[11].mxu0  ;;  %v1948_v13 = vadd.f32 %v1947_v7, %v1946_v6  ;;  %v2335_v14 = vadd.f32 %v2334_v9, %v2333_v4  ;;  %v2204_v26 = vmul.f32 %v3116_v8, %v3116_v8  ;;  %v3655_v3 = vpop.f32.mrb[11].mxu1 }
 0x12b   :  { %1811 = vst.msk [vmem:[#allocation7 + $0x20] sm:$0xf] %vm1802_vm2, %v2900_v5  ;;  %v2901_v15 = vpack.c.bf16 %v814_v12, %v814_v12  ;;  %v2336_v18 = vsel %vm1931_vm3, %v2201_v10, 0.0  ;;  %v1949_v19 = vsel %vm1931_vm3, %v814_v12, 0.0  ;;  %v2202_v20 = vmul.f32 %v814_v12, %v814_v12 }
 0x12c   :  { %1814 = vst.msk [vmem:[#allocation7 + $0x2c] sm:$0xf] %vm1802_vm2, %v2903_v11  ;;  %v2337_v22 = vadd.f32 %v2336_v18, %v2335_v14  ;;  %v1950_v23 = vadd.f32 %v1949_v19, %v1948_v13  ;;  %v2340_v34 = vsel %vm1931_vm3, %v2203_v17, 0.0  ;;  %v1953_v35 = vsel %vm1931_vm3, %v3116_v8, 0.0 }
 0x12d   :  { %1812 = vst.msk [vmem:[#allocation7 + $0x24] sm:$0xf] %vm1802_vm2, %v2901_v15  ;;  %v2338_v27 = vsel %vm1931_vm3, %v2202_v20, 0.0  ;;  %v2342_v43 = vsel %vm1931_vm3, %v2204_v26, 0.0  ;;  %v2960_v2 = vpack.c.bf16 %v3620_v21, %v3620_v21  ;;  %v2963_v7 = vpack.c.bf16 %v3623_v24, %v3623_v24 }
 0x12e   :  { %v1952_v30 = vadd.f32 %v1951_v25, %v1950_v23  ;;  %v2339_v31 = vadd.f32 %v2338_v27, %v2337_v22 }
 0x12f   :  { %v3119_v32 = vpop.f32.mrb[12].mxu0  ;;  %1871 = vst.msk [vmem:[#allocation7 + $0x110] sm:$0xf] %vm1802_vm2, %v2960_v2  ;;  %1874 = vst.msk [vmem:[#allocation7 + $0x11c] sm:$0xf] %vm1802_vm2, %v2963_v7  ;;  %v3667_v27 = vpop.f32.mrb[12].mxu1 }
 0x130   :  { %v2906_v36 = vpack.c.bf16 %v3119_v32, %v3119_v32  ;;  %v827_v37 = vpop.f32.mrb[13].mxu0  ;;  %v2341_v38 = vadd.f32 %v2340_v34, %v2339_v31  ;;  %v1954_v40 = vadd.f32 %v1953_v35, %v1952_v30  ;;  %v2207_v53 = vmul.f32 %v3119_v32, %v3119_v32  ;;  %v3672_v33 = vpop.f32.mrb[13].mxu1 }
 0x131   :  { %v2904_v39 = vpack.c.bf16 %v827_v37, %v827_v37  ;;  %v1955_v41 = vsel %vm1931_vm3, %v827_v37, 0.0  ;;  %v3120_v42 = vpop.f32.mrb[14].mxu0  ;;  %v2205_v44 = vmul.f32 %v827_v37, %v827_v37  ;;  %v1959_v63 = vsel %vm1931_vm3, %v3119_v32, 0.0 }
 0x132   :  { %1817 = vst.msk [vmem:[#allocation7 + $0x38] sm:$0xf] %vm1802_vm2, %v2906_v36  ;;  %v2907_v45 = vpack.c.bf16 %v3120_v42, %v3120_v42  ;;  %v830_v46 = vpop.f32.mrb[15].mxu0  ;;  %v1956_v48 = vadd.f32 %v1955_v41, %v1954_v40  ;;  %v2343_v49 = vadd.f32 %v2342_v43, %v2341_v38  ;;  %v2208_v0 = vmul.f32 %v3120_v42, %v3120_v42  ;;  %v3675_v36 = vpop.f32.mrb[14].mxu1 }
 0x133   :  { %1815 = vst.msk [vmem:[#allocation7 + $0x30] sm:$0xf] %vm1802_vm2, %v2904_v39  ;;  %v2905_v50 = vpack.c.bf16 %v830_v46, %v830_v46  ;;  %v2344_v55 = vsel %vm1931_vm3, %v2205_v44, 0.0  ;;  %v1957_v56 = vsel %vm1931_vm3, %v830_v46, 0.0  ;;  %v2206_v57 = vmul.f32 %v830_v46, %v830_v46  ;;  %v3681_v41 = vpop.f32.mrb[15].mxu1 }
 0x134   :  { %1818 = vst.msk [vmem:[#allocation7 + $0x3c] sm:$0xf] %vm1802_vm2, %v2907_v45  ;;  %v2345_v60 = vadd.f32 %v2344_v55, %v2343_v49  ;;  %v1958_v61 = vadd.f32 %v1957_v56, %v1956_v48  ;;  %v2348_v8 = vsel %vm1931_vm3, %v2207_v53, 0.0  ;;  %v1961_v9 = vsel %vm1931_vm3, %v3120_v42, 0.0 }
 0x135   :  { %1816 = vst.msk [vmem:[#allocation7 + $0x34] sm:$0xf] %vm1802_vm2, %v2905_v50  ;;  %v2346_v1 = vsel %vm1931_vm3, %v2206_v57, 0.0  ;;  %v2350_v18 = vsel %vm1931_vm3, %v2208_v0, 0.0  ;;  %v2961_v40 = vpack.c.bf16 %v3629_v29, %v3629_v29  ;;  %v2966_v45 = vpack.c.bf16 %v3641_v51, %v3641_v51 }
 0x136   :  { %v1960_v4 = vadd.f32 %v1959_v63, %v1958_v61  ;;  %v2347_v5 = vadd.f32 %v2346_v1, %v2345_v60 }
 0x137   :  { %v3123_v6 = vpop.f32.mrb[16].mxu0  ;;  %1872 = vst.msk [vmem:[#allocation7 + $0x114] sm:$0xf] %vm1802_vm2, %v2961_v40  ;;  %1877 = vst.msk [vmem:[#allocation7 + $0x128] sm:$0xf] %vm1802_vm2, %v2966_v45 }
 0x138   :  { %v2910_v10 = vpack.c.bf16 %v3123_v6, %v3123_v6  ;;  %v843_v11 = vpop.f32.mrb[17].mxu0  ;;  %v2349_v12 = vadd.f32 %v2348_v8, %v2347_v5  ;;  %v1962_v14 = vadd.f32 %v1961_v9, %v1960_v4  ;;  %v2211_v28 = vmul.f32 %v3123_v6, %v3123_v6 }
 0x139   :  { %v2908_v13 = vpack.c.bf16 %v843_v11, %v843_v11  ;;  %v1963_v15 = vsel %vm1931_vm3, %v843_v11, 0.0  ;;  %v3124_v17 = vpop.f32.mrb[18].mxu0  ;;  %v2209_v19 = vmul.f32 %v843_v11, %v843_v11  ;;  %v1967_v37 = vsel %vm1931_vm3, %v3123_v6, 0.0  ;;  %v3693_v6 = vpop.f32.mrb[16].mxu1 }
 0x13a   :  { %1821 = vst.msk [vmem:[#allocation7 + $0x48] sm:$0xf] %vm1802_vm2, %v2910_v10  ;;  %v2911_v20 = vpack.c.bf16 %v3124_v17, %v3124_v17  ;;  %v846_v22 = vpop.f32.mrb[19].mxu0  ;;  %v1964_v23 = vadd.f32 %v1963_v15, %v1962_v14  ;;  %v2351_v25 = vadd.f32 %v2350_v18, %v2349_v12  ;;  %v2212_v38 = vmul.f32 %v3124_v17, %v3124_v17  ;;  %v3698_v11 = vpop.f32.mrb[17].mxu1 }
 0x13b   :  { %1819 = vst.msk [vmem:[#allocation7 + $0x40] sm:$0xf] %vm1802_vm2, %v2908_v13  ;;  %v2909_v26 = vpack.c.bf16 %v846_v22, %v846_v22  ;;  %v2352_v30 = vsel %vm1931_vm3, %v2209_v19, 0.0  ;;  %v1965_v31 = vsel %vm1931_vm3, %v846_v22, 0.0  ;;  %v2210_v32 = vmul.f32 %v846_v22, %v846_v22  ;;  %4475 = vst [vmem:[#allocation15_spill] sm:$0xff] %v3693_v6  ;;  %v3701_v14 = vpop.f32.mrb[18].mxu1 }
 0x13c   :  { %1822 = vst.msk [vmem:[#allocation7 + $0x4c] sm:$0xf] %vm1802_vm2, %v2911_v20  ;;  %v2353_v34 = vadd.f32 %v2352_v30, %v2351_v25  ;;  %v1966_v35 = vadd.f32 %v1965_v31, %v1964_v23  ;;  %v2356_v46 = vsel %vm1931_vm3, %v2211_v28, 0.0  ;;  %v1969_v48 = vsel %vm1931_vm3, %v3124_v17, 0.0  ;;  %4476 = vst [vmem:[#allocation16_spill] sm:$0xff] %v3701_v14  ;;  %v3707_v20 = vpop.f32.mrb[19].mxu1 }
 0x13d   :  { %1820 = vst.msk [vmem:[#allocation7 + $0x44] sm:$0xf] %vm1802_vm2, %v2909_v26  ;;  %v2354_v39 = vsel %vm1931_vm3, %v2210_v32, 0.0  ;;  %v2358_v61 = vsel %vm1931_vm3, %v2212_v38, 0.0  ;;  %v2964_v19 = vpack.c.bf16 %v3646_v58, %v3646_v58  ;;  %4477 = vst [vmem:[#allocation17_spill] sm:$0xff] %v3707_v20  ;;  %v2967_v26 = vpack.c.bf16 %v3649_v62, %v3649_v62 }
 0x13e   :  { %v1968_v42 = vadd.f32 %v1967_v37, %v1966_v35  ;;  %v2355_v43 = vadd.f32 %v2354_v39, %v2353_v34 }
 0x13f   :  { %v3127_v44 = vpop.f32.mrb[20].mxu0  ;;  %1875 = vst.msk [vmem:[#allocation7 + $0x120] sm:$0xf] %vm1802_vm2, %v2964_v19  ;;  %1878 = vst.msk [vmem:[#allocation7 + $0x12c] sm:$0xf] %vm1802_vm2, %v2967_v26 }
 0x140   :  { %v2914_v49 = vpack.c.bf16 %v3127_v44, %v3127_v44  ;;  %v859_v50 = vpop.f32.mrb[21].mxu0  ;;  %v2357_v53 = vadd.f32 %v2356_v46, %v2355_v43  ;;  %v1970_v56 = vadd.f32 %v1969_v48, %v1968_v42  ;;  %v2215_v7 = vmul.f32 %v3127_v44, %v3127_v44 }
 0x141   :  { %v2912_v55 = vpack.c.bf16 %v859_v50, %v859_v50  ;;  %v1971_v57 = vsel %vm1931_vm3, %v859_v50, 0.0  ;;  %v3128_v60 = vpop.f32.mrb[22].mxu0  ;;  %v2213_v63 = vmul.f32 %v859_v50, %v859_v50  ;;  %v1975_v15 = vsel %vm1931_vm3, %v3127_v44, 0.0 }
 0x142   :  { %1825 = vst.msk [vmem:[#allocation7 + $0x58] sm:$0xf] %vm1802_vm2, %v2914_v49  ;;  %v2915_v0 = vpack.c.bf16 %v3128_v60, %v3128_v60  ;;  %v862_v1 = vpop.f32.mrb[23].mxu0  ;;  %v1972_v2 = vadd.f32 %v1971_v57, %v1970_v56  ;;  %v2359_v4 = vadd.f32 %v2358_v61, %v2357_v53  ;;  %v2216_v17 = vmul.f32 %v3128_v60, %v3128_v60  ;;  %v3719_v49 = vpop.f32.mrb[20].mxu1 }
 0x143   :  { %1823 = vst.msk [vmem:[#allocation7 + $0x50] sm:$0xf] %vm1802_vm2, %v2912_v55  ;;  %v2913_v5 = vpack.c.bf16 %v862_v1, %v862_v1  ;;  %v2360_v8 = vsel %vm1931_vm3, %v2213_v63, 0.0  ;;  %v1973_v9 = vsel %vm1931_vm3, %v862_v1, 0.0  ;;  %v2214_v10 = vmul.f32 %v862_v1, %v862_v1  ;;  %4478 = vst [vmem:[#allocation18_spill] sm:$0xff] %v3719_v49  ;;  %v3724_v57 = vpop.f32.mrb[21].mxu1 }
 0x144   :  { %1826 = vst.msk [vmem:[#allocation7 + $0x5c] sm:$0xf] %vm1802_vm2, %v2915_v0  ;;  %v2361_v12 = vadd.f32 %v2360_v8, %v2359_v4  ;;  %v1974_v13 = vadd.f32 %v1973_v9, %v1972_v2  ;;  %v2364_v28 = vsel %vm1931_vm3, %v2215_v7, 0.0  ;;  %v1977_v30 = vsel %vm1931_vm3, %v3128_v60, 0.0  ;;  %4479 = vst [vmem:[#allocation19_spill] sm:$0xff] %v3724_v57  ;;  %v3727_v63 = vpop.f32.mrb[22].mxu1 }
 0x145   :  { %1824 = vst.msk [vmem:[#allocation7 + $0x54] sm:$0xf] %vm1802_vm2, %v2913_v5  ;;  %v2362_v18 = vsel %vm1931_vm3, %v2214_v10, 0.0  ;;  %v2366_v40 = vsel %vm1931_vm3, %v2216_v17, 0.0  ;;  %4480 = vst [vmem:[#allocation20_spill] sm:$0xff] %v3727_v63  ;;  %v2965_v4 = vpack.c.bf16 %v3655_v3, %v3655_v3  ;;  %v3733_v5 = vpop.f32.mrb[23].mxu1  ;;  %v2970_v10 = vpack.c.bf16 %v3667_v27, %v3667_v27 }
 0x146   :  { %v1976_v22 = vadd.f32 %v1975_v15, %v1974_v13  ;;  %v2363_v23 = vadd.f32 %v2362_v18, %v2361_v12  ;;  %4481 = vst [vmem:[#allocation21_spill] sm:$0xff] %v3733_v5 }
 0x147   :  { %v3131_v25 = vpop.f32.mrb[24].mxu0  ;;  %1876 = vst.msk [vmem:[#allocation7 + $0x124] sm:$0xf] %vm1802_vm2, %v2965_v4  ;;  %1881 = vst.msk [vmem:[#allocation7 + $0x138] sm:$0xf] %vm1802_vm2, %v2970_v10 }
 0x148   :  { %v2918_v31 = vpack.c.bf16 %v3131_v25, %v3131_v25  ;;  %v875_v32 = vpop.f32.mrb[25].mxu0  ;;  %v2365_v34 = vadd.f32 %v2364_v28, %v2363_v23  ;;  %v1978_v37 = vadd.f32 %v1977_v30, %v1976_v22  ;;  %v2219_v50 = vmul.f32 %v3131_v25, %v3131_v25 }
 0x149   :  { %v2916_v35 = vpack.c.bf16 %v875_v32, %v875_v32  ;;  %v1979_v38 = vsel %vm1931_vm3, %v875_v32, 0.0  ;;  %v3132_v39 = vpop.f32.mrb[26].mxu0  ;;  %v2217_v42 = vmul.f32 %v875_v32, %v875_v32  ;;  %v1983_v0 = vsel %vm1931_vm3, %v3131_v25, 0.0 }
 0x14a   :  { %1829 = vst.msk [vmem:[#allocation7 + $0x68] sm:$0xf] %vm1802_vm2, %v2918_v31  ;;  %v2919_v43 = vpack.c.bf16 %v3132_v39, %v3132_v39  ;;  %v878_v44 = vpop.f32.mrb[27].mxu0  ;;  %v1980_v45 = vadd.f32 %v1979_v38, %v1978_v37  ;;  %v2367_v46 = vadd.f32 %v2366_v40, %v2365_v34  ;;  %v2220_v1 = vmul.f32 %v3132_v39, %v3132_v39  ;;  %v3745_v37 = vpop.f32.mrb[24].mxu1 }
 0x14b   :  { %1827 = vst.msk [vmem:[#allocation7 + $0x60] sm:$0xf] %vm1802_vm2, %v2916_v35  ;;  %v2917_v48 = vpack.c.bf16 %v878_v44, %v878_v44  ;;  %v2368_v53 = vsel %vm1931_vm3, %v2217_v42, 0.0  ;;  %v1981_v55 = vsel %vm1931_vm3, %v878_v44, 0.0  ;;  %v2218_v56 = vmul.f32 %v878_v44, %v878_v44  ;;  %4482 = vst [vmem:[#allocation22_spill] sm:$0xff] %v3745_v37 }
 0x14c   :  { %1830 = vst.msk [vmem:[#allocation7 + $0x6c] sm:$0xf] %vm1802_vm2, %v2919_v43  ;;  %v2369_v60 = vadd.f32 %v2368_v53, %v2367_v46  ;;  %v1982_v61 = vadd.f32 %v1981_v55, %v1980_v45  ;;  %v2372_v12 = vsel %vm1931_vm3, %v2219_v50, 0.0  ;;  %v1985_v13 = vsel %vm1931_vm3, %v3132_v39, 0.0  ;;  %v3750_v43 = vpop.f32.mrb[25].mxu1 }
 0x14d   :  { %1828 = vst.msk [vmem:[#allocation7 + $0x64] sm:$0xf] %vm1802_vm2, %v2917_v48  ;;  %v2370_v2 = vsel %vm1931_vm3, %v2218_v56, 0.0  ;;  %v2374_v26 = vsel %vm1931_vm3, %v2220_v1, 0.0  ;;  %4483 = vst [vmem:[#allocation23_spill] sm:$0xff] %v3750_v43  ;;  %v3753_v46 = vpop.f32.mrb[26].mxu1  ;;  %v2968_v55 = vpack.c.bf16 %v3672_v33, %v3672_v33  ;;  %v2971_v1 = vpack.c.bf16 %v3675_v36, %v3675_v36 }
 0x14e   :  { %v1984_v7 = vadd.f32 %v1983_v0, %v1982_v61  ;;  %v2371_v8 = vadd.f32 %v2370_v2, %v2369_v60  ;;  %4484 = vst [vmem:[#allocation24_spill] sm:$0xff] %v3753_v46  ;;  %v3759_v56 = vpop.f32.mrb[27].mxu1 }
 0x14f   :  { %v3135_v9 = vpop.f32.mrb[28].mxu0  ;;  %4485 = vst [vmem:[#allocation25_spill] sm:$0xff] %v3759_v56  ;;  %1879 = vst.msk [vmem:[#allocation7 + $0x130] sm:$0xf] %vm1802_vm2, %v2968_v55 }
 0x150   :  { %v2922_v15 = vpack.c.bf16 %v3135_v9, %v3135_v9  ;;  %v891_v17 = vpop.f32.mrb[29].mxu0  ;;  %v2373_v18 = vadd.f32 %v2372_v12, %v2371_v8  ;;  %v1986_v22 = vadd.f32 %v1985_v13, %v1984_v7  ;;  %v2223_v38 = vmul.f32 %v3135_v9, %v3135_v9  ;;  %1882 = vst.msk [vmem:[#allocation7 + $0x13c] sm:$0xf] %vm1802_vm2, %v2971_v1 }
 0x151   :  { %v2920_v19 = vpack.c.bf16 %v891_v17, %v891_v17  ;;  %v1987_v23 = vsel %vm1931_vm3, %v891_v17, 0.0  ;;  %v3136_v25 = vpop.f32.mrb[30].mxu0  ;;  %v2221_v28 = vmul.f32 %v891_v17, %v891_v17  ;;  %v1991_v48 = vsel %vm1931_vm3, %v3135_v9, 0.0 }
 0x152   :  { %1833 = vst.msk [vmem:[#allocation7 + $0x78] sm:$0xf] %vm1802_vm2, %v2922_v15  ;;  %v2923_v30 = vpack.c.bf16 %v3136_v25, %v3136_v25  ;;  %v894_v31 = vpop.f32.mrb[31].mxu0  ;;  %v1988_v32 = vadd.f32 %v1987_v23, %v1986_v22  ;;  %v2375_v34 = vadd.f32 %v2374_v26, %v2373_v18  ;;  %v2224_v50 = vmul.f32 %v3136_v25, %v3136_v25 }
 0x153   :  { %1831 = vst.msk [vmem:[#allocation7 + $0x70] sm:$0xf] %vm1802_vm2, %v2920_v19  ;;  %v2921_v35 = vpack.c.bf16 %v894_v31, %v894_v31  ;;  %v2376_v39 = vsel %vm1931_vm3, %v2221_v28, 0.0  ;;  %v1989_v40 = vsel %vm1931_vm3, %v894_v31, 0.0  ;;  %v2222_v42 = vmul.f32 %v894_v31, %v894_v31  ;;  %v3771_v28 = vpop.f32.mrb[28].mxu1 }
 0x154   :  { %1834 = vst.msk [vmem:[#allocation7 + $0x7c] sm:$0xf] %vm1802_vm2, %v2923_v30  ;;  %v2377_v44 = vadd.f32 %v2376_v39, %v2375_v34  ;;  %v1990_v45 = vadd.f32 %v1989_v40, %v1988_v32  ;;  %v2380_v2 = vsel %vm1931_vm3, %v2223_v38, 0.0  ;;  %v1993_v4 = vsel %vm1931_vm3, %v3136_v25, 0.0  ;;  %4486 = vst [vmem:[#allocation26_spill] sm:$0xff] %v3771_v28 }
 0x155   :  { %1832 = vst.msk [vmem:[#allocation7 + $0x74] sm:$0xf] %vm1802_vm2, %v2921_v35  ;;  %v2378_v53 = vsel %vm1931_vm3, %v2222_v42, 0.0  ;;  %v2382_v17 = vsel %vm1931_vm3, %v2224_v50, 0.0  ;;  %v3776_v35 = vpop.f32.mrb[29].mxu1 }
 0x156   :  { %v1992_v60 = vadd.f32 %v1991_v48, %v1990_v45  ;;  %v2379_v61 = vadd.f32 %v2378_v53, %v2377_v44  ;;  %v3779_v40 = vpop.f32.mrb[30].mxu1  ;;  %v2969_v48 = vpack.c.bf16 %v3681_v41, %v3681_v41 }
 0x157   :  { %v3139_v0 = vpop.f32.mrb[32].mxu0  ;;  %v3785_v50 = vpop.f32.mrb[31].mxu1 }
 0x158   :  { %v2926_v7 = vpack.c.bf16 %v3139_v0, %v3139_v0  ;;  %v907_v8 = vpop.f32.mrb[33].mxu0  ;;  %v2381_v9 = vadd.f32 %v2380_v2, %v2379_v61  ;;  %v1994_v12 = vadd.f32 %v1993_v4, %v1992_v60  ;;  %v2227_v30 = vmul.f32 %v3139_v0, %v3139_v0  ;;  %1880 = vst.msk [vmem:[#allocation7 + $0x134] sm:$0xf] %vm1802_vm2, %v2969_v48 }
 0x159   :  { %v2924_v10 = vpack.c.bf16 %v907_v8, %v907_v8  ;;  %v1995_v13 = vsel %vm1931_vm3, %v907_v8, 0.0  ;;  %v3140_v15 = vpop.f32.mrb[34].mxu0  ;;  %v2225_v18 = vmul.f32 %v907_v8, %v907_v8  ;;  %v1999_v42 = vsel %vm1931_vm3, %v3139_v0, 0.0 }
 0x15a   :  { %1837 = vst.msk [vmem:[#allocation7 + $0x88] sm:$0xf] %vm1802_vm2, %v2926_v7  ;;  %v2927_v19 = vpack.c.bf16 %v3140_v15, %v3140_v15  ;;  %v910_v22 = vpop.f32.mrb[35].mxu0  ;;  %v1996_v23 = vadd.f32 %v1995_v13, %v1994_v12  ;;  %v2383_v25 = vadd.f32 %v2382_v17, %v2381_v9  ;;  %v2228_v44 = vmul.f32 %v3140_v15, %v3140_v15 }
 0x15b   :  { %1835 = vst.msk [vmem:[#allocation7 + $0x80] sm:$0xf] %vm1802_vm2, %v2924_v10  ;;  %v2925_v26 = vpack.c.bf16 %v910_v22, %v910_v22  ;;  %v2384_v31 = vsel %vm1931_vm3, %v2225_v18, 0.0  ;;  %v1997_v32 = vsel %vm1931_vm3, %v910_v22, 0.0  ;;  %v2226_v34 = vmul.f32 %v910_v22, %v910_v22 }
 0x15c   :  { %1838 = vst.msk [vmem:[#allocation7 + $0x8c] sm:$0xf] %vm1802_vm2, %v2927_v19  ;;  %v2385_v38 = vadd.f32 %v2384_v31, %v2383_v25  ;;  %v1998_v39 = vadd.f32 %v1997_v32, %v1996_v23  ;;  %v2974_v61 = vpack.c.bf16 %v3693_v6, %v3693_v6  ;;  %v2388_v1 = vsel %vm1931_vm3, %v2227_v30, 0.0  ;;  %v3797_v25 = vpop.f32.mrb[32].mxu1 }
 0x15d   :  { %1836 = vst.msk [vmem:[#allocation7 + $0x84] sm:$0xf] %vm1802_vm2, %v2925_v26  ;;  %v2386_v45 = vsel %vm1931_vm3, %v2226_v34, 0.0  ;;  %v2001_v2 = vsel %vm1931_vm3, %v3140_v15, 0.0  ;;  %v2390_v13 = vsel %vm1931_vm3, %v2228_v44, 0.0  ;;  %v3802_v34 = vpop.f32.mrb[33].mxu1 }
 0x15e   :  { %v2000_v53 = vadd.f32 %v1999_v42, %v1998_v39  ;;  %v2387_v55 = vadd.f32 %v2386_v45, %v2385_v38  ;;  %1885 = vst.msk [vmem:[#allocation7 + $0x148] sm:$0xf] %vm1802_vm2, %v2974_v61  ;;  %v3805_v42 = vpop.f32.mrb[34].mxu1 }
 0x15f   :  { %v3143_v60 = vpop.f32.mrb[36].mxu0 }
 0x160   :  { %v2930_v4 = vpack.c.bf16 %v3143_v60, %v3143_v60  ;;  %v923_v0 = vpop.f32.mrb[37].mxu0  ;;  %v2389_v7 = vadd.f32 %v2388_v1, %v2387_v55  ;;  %v2002_v9 = vadd.f32 %v2001_v2, %v2000_v53  ;;  %v2231_v26 = vmul.f32 %v3143_v60, %v3143_v60  ;;  %v3811_v55 = vpop.f32.mrb[35].mxu1 }
 0x161   :  { %v2928_v8 = vpack.c.bf16 %v923_v0, %v923_v0  ;;  %v2003_v10 = vsel %vm1931_vm3, %v923_v0, 0.0  ;;  %v3144_v12 = vpop.f32.mrb[38].mxu0  ;;  %v2229_v17 = vmul.f32 %v923_v0, %v923_v0  ;;  %v2007_v44 = vsel %vm1931_vm3, %v3143_v60, 0.0 }
 0x162   :  { %1841 = vst.msk [vmem:[#allocation7 + $0x98] sm:$0xf] %vm1802_vm2, %v2930_v4  ;;  %v2931_v18 = vpack.c.bf16 %v3144_v12, %v3144_v12  ;;  %v926_v19 = vpop.f32.mrb[39].mxu0  ;;  %v2004_v15 = vadd.f32 %v2003_v10, %v2002_v9  ;;  %v2391_v22 = vadd.f32 %v2390_v13, %v2389_v7  ;;  %v2232_v45 = vmul.f32 %v3144_v12, %v3144_v12 }
 0x163   :  { %1839 = vst.msk [vmem:[#allocation7 + $0x90] sm:$0xf] %vm1802_vm2, %v2928_v8  ;;  %v2929_v23 = vpack.c.bf16 %v926_v19, %v926_v19  ;;  %v2392_v30 = vsel %vm1931_vm3, %v2229_v17, 0.0  ;;  %v2005_v31 = vsel %vm1931_vm3, %v926_v19, 0.0  ;;  %v2230_v32 = vmul.f32 %v926_v19, %v926_v19 }
 0x164   :  { %1842 = vst.msk [vmem:[#allocation7 + $0x9c] sm:$0xf] %vm1802_vm2, %v2931_v18  ;;  %v2393_v38 = vadd.f32 %v2392_v30, %v2391_v22  ;;  %v2006_v39 = vadd.f32 %v2005_v31, %v2004_v15  ;;  %v2972_v53 = vpack.c.bf16 %v3698_v11, %v3698_v11  ;;  %v2975_v4 = vpack.c.bf16 %v3701_v14, %v3701_v14  ;;  %v3823_v31 = vpop.f32.mrb[36].mxu1 }
 0x165   :  { %1840 = vst.msk [vmem:[#allocation7 + $0x94] sm:$0xf] %vm1802_vm2, %v2929_v23  ;;  %v2394_v48 = vsel %vm1931_vm3, %v2230_v32, 0.0  ;;  %v2396_v0 = vsel %vm1931_vm3, %v2231_v26, 0.0  ;;  %v2009_v7 = vsel %vm1931_vm3, %v3144_v12, 0.0  ;;  %v2398_v19 = vsel %vm1931_vm3, %v2232_v45, 0.0 }
 0x166   :  { %v2008_v61 = vadd.f32 %v2007_v44, %v2006_v39  ;;  %v2395_v1 = vadd.f32 %v2394_v48, %v2393_v38  ;;  %1883 = vst.msk [vmem:[#allocation7 + $0x140] sm:$0xf] %vm1802_vm2, %v2972_v53  ;;  %1886 = vst.msk [vmem:[#allocation7 + $0x14c] sm:$0xf] %vm1802_vm2, %v2975_v4  ;;  %v3828_v45 = vpop.f32.mrb[37].mxu1 }
 0x167   :  { %v3147_v2 = vpop.f32.mrb[40].mxu0 }
 0x168   :  { %v2934_v8 = vpack.c.bf16 %v3147_v2, %v3147_v2  ;;  %v939_v60 = vpop.f32.mrb[41].mxu0  ;;  %v2397_v9 = vadd.f32 %v2396_v0, %v2395_v1  ;;  %v2010_v13 = vadd.f32 %v2009_v7, %v2008_v61  ;;  %v2235_v32 = vmul.f32 %v3147_v2, %v3147_v2  ;;  %v3831_v61 = vpop.f32.mrb[38].mxu1 }
 0x169   :  { %v2932_v10 = vpack.c.bf16 %v939_v60, %v939_v60  ;;  %v2011_v17 = vsel %vm1931_vm3, %v939_v60, 0.0  ;;  %v3148_v18 = vpop.f32.mrb[42].mxu0  ;;  %v2233_v15 = vmul.f32 %v939_v60, %v939_v60  ;;  %v2015_v1 = vsel %vm1931_vm3, %v3147_v2, 0.0 }
 0x16a   :  { %1845 = vst.msk [vmem:[#allocation7 + $0xa8] sm:$0xf] %vm1802_vm2, %v2934_v8  ;;  %v2935_v22 = vpack.c.bf16 %v3148_v18, %v3148_v18  ;;  %v942_v23 = vpop.f32.mrb[43].mxu0  ;;  %v2012_v12 = vadd.f32 %v2011_v17, %v2010_v13  ;;  %v2399_v26 = vadd.f32 %v2398_v19, %v2397_v9  ;;  %v2236_v4 = vmul.f32 %v3148_v18, %v3148_v18  ;;  %v3837_v8 = vpop.f32.mrb[39].mxu1 }
 0x16b   :  { %1843 = vst.msk [vmem:[#allocation7 + $0xa0] sm:$0xf] %vm1802_vm2, %v2932_v10  ;;  %v2933_v30 = vpack.c.bf16 %v942_v23, %v942_v23  ;;  %v2400_v38 = vsel %vm1931_vm3, %v2233_v15, 0.0  ;;  %v2013_v39 = vsel %vm1931_vm3, %v942_v23, 0.0  ;;  %v2234_v44 = vmul.f32 %v942_v23, %v942_v23 }
 0x16c   :  { %1846 = vst.msk [vmem:[#allocation7 + $0xac] sm:$0xf] %vm1802_vm2, %v2935_v22  ;;  %v2401_v48 = vadd.f32 %v2400_v38, %v2399_v26  ;;  %v2014_v53 = vadd.f32 %v2013_v39, %v2012_v12  ;;  %v2973_v7 = vpack.c.bf16 %v3707_v20, %v3707_v20  ;;  %v2978_v13 = vpack.c.bf16 %v3719_v49, %v3719_v49 }
 0x16d   :  { %1844 = vst.msk [vmem:[#allocation7 + $0xa4] sm:$0xf] %vm1802_vm2, %v2933_v30  ;;  %v2402_v0 = vsel %vm1931_vm3, %v2234_v44, 0.0  ;;  %v2404_v17 = vsel %vm1931_vm3, %v2235_v32, 0.0  ;;  %v2017_v19 = vsel %vm1931_vm3, %v3148_v18, 0.0  ;;  %v2406_v38 = vsel %vm1931_vm3, %v2236_v4, 0.0 }
 0x16e   :  { %v2016_v60 = vadd.f32 %v2015_v1, %v2014_v53  ;;  %v2403_v9 = vadd.f32 %v2402_v0, %v2401_v48  ;;  %1884 = vst.msk [vmem:[#allocation7 + $0x144] sm:$0xf] %vm1802_vm2, %v2973_v7  ;;  %1889 = vst.msk [vmem:[#allocation7 + $0x158] sm:$0xf] %vm1802_vm2, %v2978_v13  ;;  %v3849_v1 = vpop.f32.mrb[40].mxu1 }
 0x16f   :  { %v3151_v10 = vpop.f32.mrb[44].mxu0 }
 0x170   :  { %v2938_v15 = vpack.c.bf16 %v3151_v10, %v3151_v10  ;;  %v955_v2 = vpop.f32.mrb[45].mxu0  ;;  %v2405_v22 = vadd.f32 %v2404_v17, %v2403_v9  ;;  %v2018_v12 = vadd.f32 %v2017_v19, %v2016_v60  ;;  %v2239_v0 = vmul.f32 %v3151_v10, %v3151_v10  ;;  %v3854_v9 = vpop.f32.mrb[41].mxu1 }
 0x171   :  { %v2936_v23 = vpack.c.bf16 %v955_v2, %v955_v2  ;;  %v2019_v26 = vsel %vm1931_vm3, %v955_v2, 0.0  ;;  %v3152_v30 = vpop.f32.mrb[46].mxu0  ;;  %v2237_v39 = vmul.f32 %v955_v2, %v955_v2  ;;  %v3857_v19 = vpop.f32.mrb[42].mxu1 }
 0x172   :  { %1849 = vst.msk [vmem:[#allocation7 + $0xb8] sm:$0xf] %vm1802_vm2, %v2938_v15  ;;  %v2939_v32 = vpack.c.bf16 %v3152_v30, %v3152_v30  ;;  %v958_v44 = vpop.f32.mrb[47].mxu0  ;;  %v2020_v18 = vadd.f32 %v2019_v26, %v2018_v12  ;;  %v2407_v48 = vadd.f32 %v2406_v38, %v2405_v22  ;;  %v2023_v15 = vsel %vm1931_vm3, %v3151_v10, 0.0  ;;  %v3863_v12 = vpop.f32.mrb[43].mxu1 }
 0x173   :  { %1847 = vst.msk [vmem:[#allocation7 + $0xb0] sm:$0xf] %vm1802_vm2, %v2936_v23  ;;  %v2937_v53 = vpack.c.bf16 %v958_v44, %v958_v44  ;;  %v2408_v7 = vsel %vm1931_vm3, %v2237_v39, 0.0  ;;  %v2021_v60 = vsel %vm1931_vm3, %v958_v44, 0.0  ;;  %v2238_v4 = vmul.f32 %v958_v44, %v958_v44 }
 0x174   :  { %1850 = vst.msk [vmem:[#allocation7 + $0xbc] sm:$0xf] %vm1802_vm2, %v2939_v32  ;;  %v2409_v13 = vadd.f32 %v2408_v7, %v2407_v48  ;;  %v2022_v17 = vadd.f32 %v2021_v60, %v2020_v18  ;;  %v2240_v2 = vmul.f32 %v3152_v30, %v3152_v30  ;;  %v2976_v23 = vpack.c.bf16 %v3724_v57, %v3724_v57 }
 0x175   :  { %1848 = vst.msk [vmem:[#allocation7 + $0xb4] sm:$0xf] %vm1802_vm2, %v2937_v53  ;;  %v2410_v22 = vsel %vm1931_vm3, %v2238_v4, 0.0  ;;  %v2979_v32 = vpack.c.bf16 %v3727_v63, %v3727_v63  ;;  %v2412_v44 = vsel %vm1931_vm3, %v2239_v0, 0.0  ;;  %v2025_v18 = vsel %vm1931_vm3, %v3152_v30, 0.0 }
 0x176   :  { %v2024_v26 = vadd.f32 %v2023_v15, %v2022_v17  ;;  %v2411_v38 = vadd.f32 %v2410_v22, %v2409_v13  ;;  %1887 = vst.msk [vmem:[#allocation7 + $0x150] sm:$0xf] %vm1802_vm2, %v2976_v23  ;;  %v2414_v13 = vsel %vm1931_vm3, %v2240_v2, 0.0 }
 0x177   :  { %v3155_v39 = vpop.f32.mrb[48].mxu0  ;;  %1890 = vst.msk [vmem:[#allocation7 + $0x15c] sm:$0xf] %vm1802_vm2, %v2979_v32 }
 0x178   :  { %v2942_v48 = vpack.c.bf16 %v3155_v39, %v3155_v39  ;;  %v971_v10 = vpop.f32.mrb[49].mxu0  ;;  %v2413_v53 = vadd.f32 %v2412_v44, %v2411_v38  ;;  %v2026_v60 = vadd.f32 %v2025_v18, %v2024_v26  ;;  %v3875_v38 = vpop.f32.mrb[44].mxu1  ;;  %v2243_v26 = vmul.f32 %v3155_v39, %v3155_v39 }
 0x179   :  { %v2940_v7 = vpack.c.bf16 %v971_v10, %v971_v10  ;;  %v2027_v4 = vsel %vm1931_vm3, %v971_v10, 0.0  ;;  %v3156_v49 = vpop.f32.mrb[50].mxu0  ;;  %v2241_v17 = vmul.f32 %v971_v10, %v971_v10  ;;  %v3880_v18 = vpop.f32.mrb[45].mxu1 }
 0x17a   :  { %1853 = vst.msk [vmem:[#allocation7 + $0xc8] sm:$0xf] %vm1802_vm2, %v2942_v48  ;;  %v2943_v0 = vpack.c.bf16 %v3156_v49, %v3156_v49  ;;  %v974_v15 = vpop.f32.mrb[51].mxu0  ;;  %v2028_v30 = vadd.f32 %v2027_v4, %v2026_v60  ;;  %v2415_v22 = vadd.f32 %v2414_v13, %v2413_v53  ;;  %v2031_v53 = vsel %vm1931_vm3, %v3155_v39, 0.0 }
 0x17b   :  { %1851 = vst.msk [vmem:[#allocation7 + $0xc0] sm:$0xf] %vm1802_vm2, %v2940_v7  ;;  %v2941_v23 = vpack.c.bf16 %v974_v15, %v974_v15  ;;  %v2416_v44 = vsel %vm1931_vm3, %v2241_v17, 0.0  ;;  %v2029_v32 = vsel %vm1931_vm3, %v974_v15, 0.0  ;;  %v2242_v2 = vmul.f32 %v974_v15, %v974_v15  ;;  %v3883_v7 = vpop.f32.mrb[46].mxu1 }
 0x17c   :  { %1854 = vst.msk [vmem:[#allocation7 + $0xcc] sm:$0xf] %vm1802_vm2, %v2943_v0  ;;  %v2417_v48 = vadd.f32 %v2416_v44, %v2415_v22  ;;  %v2030_v10 = vadd.f32 %v2029_v32, %v2028_v30  ;;  %v2244_v60 = vmul.f32 %v3156_v49, %v3156_v49  ;;  %v2977_v13 = vpack.c.bf16 %v3733_v5, %v3733_v5  ;;  %v3889_v17 = vpop.f32.mrb[47].mxu1 }
 0x17d   :  { %1852 = vst.msk [vmem:[#allocation7 + $0xc4] sm:$0xf] %vm1802_vm2, %v2941_v23  ;;  %v2418_v4 = vsel %vm1931_vm3, %v2242_v2, 0.0  ;;  %v2982_v22 = vpack.c.bf16 %v3745_v37, %v3745_v37  ;;  %v2420_v30 = vsel %vm1931_vm3, %v2243_v26, 0.0  ;;  %v2033_v23 = vsel %vm1931_vm3, %v3156_v49, 0.0 }
 0x17e   :  { %v2032_v0 = vadd.f32 %v2031_v53, %v2030_v10  ;;  %v2419_v15 = vadd.f32 %v2418_v4, %v2417_v48  ;;  %1888 = vst.msk [vmem:[#allocation7 + $0x154] sm:$0xf] %vm1802_vm2, %v2977_v13  ;;  %v2422_v48 = vsel %vm1931_vm3, %v2244_v60, 0.0 }
 0x17f   :  { %v3159_v63 = vpop.f32.mrb[52].mxu0  ;;  %1893 = vst.msk [vmem:[#allocation7 + $0x168] sm:$0xf] %vm1802_vm2, %v2982_v22 }
 0x180   :  { %v2946_v44 = vpack.c.bf16 %v3159_v63, %v3159_v63  ;;  %v987_v39 = vpop.f32.mrb[53].mxu0  ;;  %v2421_v32 = vadd.f32 %v2420_v30, %v2419_v15  ;;  %v2034_v57 = vadd.f32 %v2033_v23, %v2032_v0  ;;  %v3901_v15 = vpop.f32.mrb[48].mxu1  ;;  %v2247_v0 = vmul.f32 %v3159_v63, %v3159_v63 }
 0x181   :  { %v2944_v2 = vpack.c.bf16 %v987_v39, %v987_v39  ;;  %v2035_v5 = vsel %vm1931_vm3, %v987_v39, 0.0  ;;  %v3160_v14 = vpop.f32.mrb[54].mxu0  ;;  %v2245_v10 = vmul.f32 %v987_v39, %v987_v39  ;;  %v3906_v23 = vpop.f32.mrb[49].mxu1 }
 0x182   :  { %1857 = vst.msk [vmem:[#allocation7 + $0xd8] sm:$0xf] %vm1802_vm2, %v2946_v44  ;;  %v2947_v26 = vpack.c.bf16 %v3160_v14, %v3160_v14  ;;  %v990_v53 = vpop.f32.mrb[55].mxu0  ;;  %v2036_v49 = vadd.f32 %v2035_v5, %v2034_v57  ;;  %v2423_v4 = vadd.f32 %v2422_v48, %v2421_v32  ;;  %v2039_v57 = vsel %vm1931_vm3, %v3159_v63, 0.0 }
 0x183   :  { %1855 = vst.msk [vmem:[#allocation7 + $0xd0] sm:$0xf] %vm1802_vm2, %v2944_v2  ;;  %v2945_v13 = vpack.c.bf16 %v990_v53, %v990_v53  ;;  %v2424_v30 = vsel %vm1931_vm3, %v2245_v10, 0.0  ;;  %v2037_v22 = vsel %vm1931_vm3, %v990_v53, 0.0  ;;  %v2246_v60 = vmul.f32 %v990_v53, %v990_v53  ;;  %v3909_v2 = vpop.f32.mrb[50].mxu1 }
 0x184   :  { %1858 = vst.msk [vmem:[#allocation7 + $0xdc] sm:$0xf] %vm1802_vm2, %v2947_v26  ;;  %v2425_v44 = vadd.f32 %v2424_v30, %v2423_v4  ;;  %v2038_v39 = vadd.f32 %v2037_v22, %v2036_v49  ;;  %v2248_v5 = vmul.f32 %v3160_v14, %v3160_v14  ;;  %v2980_v48 = vpack.c.bf16 %v3750_v43, %v3750_v43  ;;  %v3915_v10 = vpop.f32.mrb[51].mxu1 }
 0x185   :  { %1856 = vst.msk [vmem:[#allocation7 + $0xd4] sm:$0xf] %vm1802_vm2, %v2945_v13  ;;  %v2426_v32 = vsel %vm1931_vm3, %v2246_v60, 0.0  ;;  %v2983_v4 = vpack.c.bf16 %v3753_v46, %v3753_v46  ;;  %v2428_v49 = vsel %vm1931_vm3, %v2247_v0, 0.0  ;;  %v2041_v13 = vsel %vm1931_vm3, %v3160_v14, 0.0 }
 0x186   :  { %v2040_v26 = vadd.f32 %v2039_v57, %v2038_v39  ;;  %v2427_v53 = vadd.f32 %v2426_v32, %v2425_v44  ;;  %1891 = vst.msk [vmem:[#allocation7 + $0x160] sm:$0xf] %vm1802_vm2, %v2980_v48  ;;  %v2430_v44 = vsel %vm1931_vm3, %v2248_v5, 0.0 }
 0x187   :  { %v3163_v37 = vpop.f32.mrb[56].mxu0  ;;  %1894 = vst.msk [vmem:[#allocation7 + $0x16c] sm:$0xf] %vm1802_vm2, %v2983_v4 }
 0x188   :  { %v2950_v30 = vpack.c.bf16 %v3163_v37, %v3163_v37  ;;  %v1003_v63 = vpop.f32.mrb[57].mxu0  ;;  %v2429_v22 = vadd.f32 %v2428_v49, %v2427_v53  ;;  %v2042_v6 = vadd.f32 %v2041_v13, %v2040_v26  ;;  %v3927_v53 = vpop.f32.mrb[52].mxu1  ;;  %v2251_v26 = vmul.f32 %v3163_v37, %v3163_v37 }
 0x189   :  { %v2948_v60 = vpack.c.bf16 %v1003_v63, %v1003_v63  ;;  %v2043_v43 = vsel %vm1931_vm3, %v1003_v63, 0.0  ;;  %v3164_v20 = vpop.f32.mrb[58].mxu0  ;;  %v2249_v39 = vmul.f32 %v1003_v63, %v1003_v63  ;;  %v3932_v13 = vpop.f32.mrb[53].mxu1 }
 0x18a   :  { %1861 = vst.msk [vmem:[#allocation7 + $0xe8] sm:$0xf] %vm1802_vm2, %v2950_v30  ;;  %v2951_v0 = vpack.c.bf16 %v3164_v20, %v3164_v20  ;;  %v1006_v57 = vpop.f32.mrb[59].mxu0  ;;  %v2044_v14 = vadd.f32 %v2043_v43, %v2042_v6  ;;  %v2431_v32 = vadd.f32 %v2430_v44, %v2429_v22  ;;  %v2047_v6 = vsel %vm1931_vm3, %v3163_v37, 0.0 }
 0x18b   :  { %1859 = vst.msk [vmem:[#allocation7 + $0xe0] sm:$0xf] %vm1802_vm2, %v2948_v60  ;;  %v2949_v48 = vpack.c.bf16 %v1006_v57, %v1006_v57  ;;  %v2432_v49 = vsel %vm1931_vm3, %v2249_v39, 0.0  ;;  %v2045_v4 = vsel %vm1931_vm3, %v1006_v57, 0.0  ;;  %v2250_v5 = vmul.f32 %v1006_v57, %v1006_v57  ;;  %v3935_v60 = vpop.f32.mrb[54].mxu1 }
 0x18c   :  { %1862 = vst.msk [vmem:[#allocation7 + $0xec] sm:$0xf] %vm1802_vm2, %v2951_v0  ;;  %v2433_v30 = vadd.f32 %v2432_v49, %v2431_v32  ;;  %v2046_v63 = vadd.f32 %v2045_v4, %v2044_v14  ;;  %4487 = vst [vmem:[#allocation27_spill] sm:$0xff] %v3935_v60  ;;  %v2252_v43 = vmul.f32 %v3164_v20, %v3164_v20  ;;  %v3941_v39 = vpop.f32.mrb[55].mxu1  ;;  %v2436_v14 = vsel %vm1931_vm3, %v2251_v26, 0.0 }
 0x18d   :  { %1860 = vst.msk [vmem:[#allocation7 + $0xe4] sm:$0xf] %vm1802_vm2, %v2949_v48  ;;  %v2434_v22 = vsel %vm1931_vm3, %v2250_v5, 0.0  ;;  %v2981_v44 = vpack.c.bf16 %v3759_v56, %v3759_v56  ;;  %4488 = vst [vmem:[#allocation28_spill] sm:$0xff] %v3941_v39  ;;  %v2986_v32 = vpack.c.bf16 %v3771_v28, %v3771_v28  ;;  %v2049_v48 = vsel %vm1931_vm3, %v3164_v20, 0.0 }
 0x18e   :  { %v2048_v0 = vadd.f32 %v2047_v6, %v2046_v63  ;;  %v2435_v57 = vadd.f32 %v2434_v22, %v2433_v30  ;;  %v2438_v30 = vsel %vm1931_vm3, %v2252_v43, 0.0 }
 0x18f   :  { %v3167_v46 = vpop.f32.mrb[60].mxu0  ;;  %1892 = vst.msk [vmem:[#allocation7 + $0x164] sm:$0xf] %vm1802_vm2, %v2981_v44  ;;  %1897 = vst.msk [vmem:[#allocation7 + $0x178] sm:$0xf] %vm1802_vm2, %v2986_v32 }
 0x190   :  { %v2954_v49 = vpack.c.bf16 %v3167_v46, %v3167_v46  ;;  %v1019_v37 = vpop.f32.mrb[61].mxu0  ;;  %v2437_v4 = vadd.f32 %v2436_v14, %v2435_v57  ;;  %v2050_v60 = vadd.f32 %v2049_v48, %v2048_v0  ;;  %v3953_v57 = vpop.f32.mrb[56].mxu1  ;;  %v2255_v0 = vmul.f32 %v3167_v46, %v3167_v46 }
 0x191   :  { %v2952_v5 = vpack.c.bf16 %v1019_v37, %v1019_v37  ;;  %v2051_v56 = vsel %vm1931_vm3, %v1019_v37, 0.0  ;;  %v3168_v39 = vpop.f32.mrb[62].mxu0  ;;  %v2253_v63 = vmul.f32 %v1019_v37, %v1019_v37  ;;  %v3958_v48 = vpop.f32.mrb[57].mxu1 }
 0x192   :  { %1865 = vst.msk [vmem:[#allocation7 + $0xf8] sm:$0xf] %vm1802_vm2, %v2954_v49  ;;  %v2955_v26 = vpack.c.bf16 %v3168_v39, %v3168_v39  ;;  %v1022_v6 = vpop.f32.mrb[63].mxu0  ;;  %v2052_v20 = vadd.f32 %v2051_v56, %v2050_v60  ;;  %v2439_v22 = vadd.f32 %v2438_v30, %v2437_v4  ;;  %v2257_v56 = vmul.f32 %v3593_v52, %v3593_v52  ;;  %v3963_v60 = vpop.f32.mrb[58].mxu1 }
 0x193   :  { %1863 = vst.msk [vmem:[#allocation7 + $0xf0] sm:$0xf] %vm1802_vm2, %v2952_v5  ;;  %v2953_v44 = vpack.c.bf16 %v1022_v6, %v1022_v6  ;;  %v2440_v14 = vsel %vm1931_vm3, %v2253_v63, 0.0  ;;  %v2053_v32 = vsel %vm1931_vm3, %v1022_v6, 0.0  ;;  %v2254_v43 = vmul.f32 %v1022_v6, %v1022_v6 }
 0x194   :  { %1866 = vst.msk [vmem:[#allocation7 + $0xfc] sm:$0xf] %vm1802_vm2, %v2955_v26  ;;  %v2441_v49 = vadd.f32 %v2440_v14, %v2439_v22  ;;  %v2054_v37 = vadd.f32 %v2053_v32, %v2052_v20  ;;  %v2055_v4 = vsel %vm1931_vm3, %v3167_v46, 0.0  ;;  %v2256_v5 = vmul.f32 %v3168_v39, %v3168_v39  ;;  %v3969_v26 = vpop.f32.mrb[59].mxu1 }
 0x195   :  { %1864 = vst.msk [vmem:[#allocation7 + $0xf4] sm:$0xf] %vm1802_vm2, %v2953_v44  ;;  %v2442_v30 = vsel %vm1931_vm3, %v2254_v43, 0.0  ;;  %v2984_v63 = vpack.c.bf16 %v3776_v35, %v3776_v35  ;;  %v2987_v20 = vpack.c.bf16 %v3779_v40, %v3779_v40  ;;  %v2444_v44 = vsel %vm1931_vm3, %v2255_v0, 0.0 }
 0x196   :  { %v2056_v6 = vadd.f32 %v2055_v4, %v2054_v37  ;;  %v2443_v22 = vadd.f32 %v2442_v30, %v2441_v49  ;;  %v2057_v14 = vsel %vm1931_vm3, %v3168_v39, 0.0  ;;  %v2059_v46 = vsel %vm1931_vm3, %v3593_v52, 0.0 }
 0x197   :  { %1895 = vst.msk [vmem:[#allocation7 + $0x170] sm:$0xf] %vm1802_vm2, %v2984_v63  ;;  %v2985_v32 = vpack.c.bf16 %v3785_v50, %v3785_v50  ;;  %1898 = vst.msk [vmem:[#allocation7 + $0x17c] sm:$0xf] %vm1802_vm2, %v2987_v20  ;;  %v2446_v49 = vsel %vm1931_vm3, %v2256_v5, 0.0  ;;  %v2448_v37 = vsel %vm1931_vm3, %v2257_v56, 0.0  ;;  %v2258_v0 = vmul.f32 %v3603_v59, %v3603_v59 }
 0x198   :  { %v2058_v43 = vadd.f32 %v2057_v14, %v2056_v6  ;;  %v2445_v28 = vadd.f32 %v2444_v44, %v2443_v22  ;;  %v2990_v52 = vpack.c.bf16 %v3797_v25, %v3797_v25  ;;  %v2988_v30 = vpack.c.bf16 %v3802_v34, %v3802_v34  ;;  %v3990_v63 = vpop.f32.mrb[60].mxu1 }
 0x199   :  { %1896 = vst.msk [vmem:[#allocation7 + $0x174] sm:$0xf] %vm1802_vm2, %v2985_v32  ;;  %v2259_v5 = vmul.f32 %v3587_v47, %v3587_v47  ;;  %v2061_v56 = vsel %vm1931_vm3, %v3603_v59, 0.0  ;;  %v2991_v6 = vpack.c.bf16 %v3805_v42, %v3805_v42  ;;  %v3999_v22 = vpop.f32.mrb[61].mxu1  ;;  %v2450_v59 = vsel %vm1931_vm3, %v2258_v0, 0.0 }
 0x19a   :  { %v2447_v39 = vadd.f32 %v2446_v49, %v2445_v28  ;;  %v2060_v4 = vadd.f32 %v2059_v46, %v2058_v43  ;;  %1901 = vst.msk [vmem:[#allocation7 + $0x188] sm:$0xf] %vm1802_vm2, %v2990_v52  ;;  %v2063_v28 = vsel %vm1931_vm3, %v3587_v47, 0.0  ;;  %1899 = vst.msk [vmem:[#allocation7 + $0x180] sm:$0xf] %vm1802_vm2, %v2988_v30  ;;  %v4004_v14 = vpop.f32.mrb[62].mxu1  ;;  %v2260_v46 = vmul.f32 %v3596_v54, %v3596_v54 }
 0x19b   :  { %v2261_v32 = vmul.f32 %v3620_v21, %v3620_v21  ;;  %1902 = vst.msk [vmem:[#allocation7 + $0x18c] sm:$0xf] %vm1802_vm2, %v2991_v6  ;;  %v2989_v43 = vpack.c.bf16 %v3811_v55, %v3811_v55  ;;  %v4014_v47 = vpop.f32.mrb[63].mxu1  ;;  %v2994_v52 = vpack.c.bf16 %v3823_v31, %v3823_v31  ;;  %v2065_v0 = vsel %vm1931_vm3, %v3596_v54, 0.0 }
 0x19c   :  { %v2449_v20 = vadd.f32 %v2448_v37, %v2447_v39  ;;  %v2062_v44 = vadd.f32 %v2061_v56, %v2060_v4  ;;  %v2452_v39 = vsel %vm1931_vm3, %v2259_v5, 0.0  ;;  %v2067_v4 = vsel %vm1931_vm3, %v3620_v21, 0.0 }
 0x19d   :  { %1900 = vst.msk [vmem:[#allocation7 + $0x184] sm:$0xf] %vm1802_vm2, %v2989_v43  ;;  %v2992_v30 = vpack.c.bf16 %v3828_v45, %v3828_v45  ;;  %1905 = vst.msk [vmem:[#allocation7 + $0x198] sm:$0xf] %vm1802_vm2, %v2994_v52  ;;  %v2262_v5 = vmul.f32 %v3629_v29, %v3629_v29  ;;  %v2995_v54 = vpack.c.bf16 %v3831_v61, %v3831_v61 }
 0x19e   :  { %v2064_v49 = vadd.f32 %v2063_v28, %v2062_v44  ;;  %v2451_v37 = vadd.f32 %v2450_v59, %v2449_v20  ;;  %v2454_v28 = vsel %vm1931_vm3, %v2260_v46, 0.0  ;;  %v2456_v20 = vsel %vm1931_vm3, %v2261_v32, 0.0 }
 0x19f   :  { %1903 = vst.msk [vmem:[#allocation7 + $0x190] sm:$0xf] %vm1802_vm2, %v2992_v30  ;;  %v2993_v59 = vpack.c.bf16 %v3837_v8, %v3837_v8  ;;  %v2263_v43 = vmul.f32 %v3615_v16, %v3615_v16  ;;  %v2069_v46 = vsel %vm1931_vm3, %v3629_v29, 0.0  ;;  %1906 = vst.msk [vmem:[#allocation7 + $0x19c] sm:$0xf] %vm1802_vm2, %v2995_v54  ;;  %v2998_v32 = vpack.c.bf16 %v3849_v1, %v3849_v1 }
 0x1a0   :  { %v2453_v56 = vadd.f32 %v2452_v39, %v2451_v37  ;;  %v2066_v6 = vadd.f32 %v2065_v0, %v2064_v49  ;;  %v2071_v49 = vsel %vm1931_vm3, %v3615_v16, 0.0  ;;  %v2264_v39 = vmul.f32 %v3623_v24, %v3623_v24 }
 0x1a1   :  { %1904 = vst.msk [vmem:[#allocation7 + $0x194] sm:$0xf] %vm1802_vm2, %v2993_v59  ;;  %v2458_v0 = vsel %vm1931_vm3, %v2262_v5, 0.0  ;;  %v2265_v29 = vmul.f32 %v3646_v58, %v3646_v58  ;;  %1909 = vst.msk [vmem:[#allocation7 + $0x1a8] sm:$0xf] %vm1802_vm2, %v2998_v32  ;;  %v2999_v16 = vpack.c.bf16 %v3857_v19, %v3857_v19  ;;  %v2997_v5 = vpack.c.bf16 %v3863_v12, %v3863_v12 }
 0x1a2   :  { %v2068_v21 = vadd.f32 %v2067_v4, %v2066_v6  ;;  %v2455_v44 = vadd.f32 %v2454_v28, %v2453_v56  ;;  %v2996_v4 = vpack.c.bf16 %v3854_v9, %v3854_v9  ;;  %v2460_v6 = vsel %vm1931_vm3, %v2263_v43, 0.0 }
 0x1a3   :  { %v2073_v28 = vsel %vm1931_vm3, %v3623_v24, 0.0  ;;  %1910 = vst.msk [vmem:[#allocation7 + $0x1ac] sm:$0xf] %vm1802_vm2, %v2999_v16  ;;  %v2464_v59 = vsel %vm1931_vm3, %v2265_v29, 0.0  ;;  %v2266_v43 = vmul.f32 %v3655_v3, %v3655_v3  ;;  %1908 = vst.msk [vmem:[#allocation7 + $0x1a4] sm:$0xf] %vm1802_vm2, %v2997_v5  ;;  %v3002_v24 = vpack.c.bf16 %v3875_v38, %v3875_v38 }
 0x1a4   :  { %v2457_v37 = vadd.f32 %v2456_v20, %v2455_v44  ;;  %v2070_v52 = vadd.f32 %v2069_v46, %v2068_v21  ;;  %v2075_v20 = vsel %vm1931_vm3, %v3646_v58, 0.0  ;;  %1907 = vst.msk [vmem:[#allocation7 + $0x1a0] sm:$0xf] %vm1802_vm2, %v2996_v4  ;;  %v2462_v44 = vsel %vm1931_vm3, %v2264_v39, 0.0 }
 0x1a5   :  { %v3000_v32 = vpack.c.bf16 %v3880_v18, %v3880_v18  ;;  %1913 = vst.msk [vmem:[#allocation7 + $0x1b8] sm:$0xf] %vm1802_vm2, %v3002_v24  ;;  %v2079_v39 = vsel %vm1931_vm3, %v3641_v51, 0.0  ;;  %v2268_v4 = vmul.f32 %v3649_v62, %v3649_v62  ;;  %v2083_v5 = vsel %vm1931_vm3, %v3672_v33, 0.0 }
 0x1a6   :  { %v2072_v30 = vadd.f32 %v2071_v49, %v2070_v52  ;;  %v2459_v56 = vadd.f32 %v2458_v0, %v2457_v37  ;;  %v2267_v49 = vmul.f32 %v3641_v51, %v3641_v51  ;;  %v2077_v37 = vsel %vm1931_vm3, %v3655_v3, 0.0 }
 0x1a7   :  { %v3003_v52 = vpack.c.bf16 %v3883_v7, %v3883_v7  ;;  %1911 = vst.msk [vmem:[#allocation7 + $0x1b0] sm:$0xf] %vm1802_vm2, %v3000_v32  ;;  %v2269_v3 = vmul.f32 %v3672_v33, %v3672_v33  ;;  %v3006_v51 = vpack.c.bf16 %v3901_v15, %v3901_v15  ;;  %v2270_v24 = vmul.f32 %v3681_v41, %v3681_v41 }
 0x1a8   :  { %v2461_v54 = vadd.f32 %v2460_v6, %v2459_v56  ;;  %v2074_v21 = vadd.f32 %v2073_v28, %v2072_v30  ;;  %v2466_v30 = vsel %vm1931_vm3, %v2266_v43, 0.0  ;;  %v3001_v56 = vpack.c.bf16 %v3889_v17, %v3889_v17 }
 0x1a9   :  { %1914 = vst.msk [vmem:[#allocation7 + $0x1bc] sm:$0xf] %vm1802_vm2, %v3003_v52  ;;  %v2468_v28 = vsel %vm1931_vm3, %v2267_v49, 0.0  ;;  %1917 = vst.msk [vmem:[#allocation7 + $0x1c8] sm:$0xf] %vm1802_vm2, %v3006_v51  ;;  %v2472_v43 = vsel %vm1931_vm3, %v2269_v3, 0.0  ;;  %v2271_v32 = vmul.f32 %v3667_v27, %v3667_v27 }
 0x1aa   :  { %v2076_v58 = vadd.f32 %v2075_v20, %v2074_v21  ;;  %v2463_v46 = vadd.f32 %v2462_v44, %v2461_v54  ;;  %v2081_v20 = vsel %vm1931_vm3, %v3649_v62, 0.0  ;;  %1912 = vst.msk [vmem:[#allocation7 + $0x1b4] sm:$0xf] %vm1802_vm2, %v3001_v56  ;;  %v3004_v54 = vpack.c.bf16 %v3906_v23, %v3906_v23 }
 0x1ab   :  { %v3007_v62 = vpack.c.bf16 %v3909_v2, %v3909_v2  ;;  %v2085_v49 = vsel %vm1931_vm3, %v3681_v41, 0.0  ;;  %v2087_v52 = vsel %vm1931_vm3, %v3667_v27, 0.0  ;;  %v2273_v41 = vmul.f32 %v3698_v11, %v3698_v11  ;;  %v4489_v27 = vld [vmem:[#allocation27_spill] sm:$0xff] }
 0x1ac   :  { %v2465_v0 = vadd.f32 %v2464_v59, %v2463_v46  ;;  %v2078_v29 = vadd.f32 %v2077_v37, %v2076_v58  ;;  %v2470_v59 = vsel %vm1931_vm3, %v2268_v4, 0.0  ;;  %1915 = vst.msk [vmem:[#allocation7 + $0x1c0] sm:$0xf] %vm1802_vm2, %v3004_v54  ;;  %v3005_v46 = vpack.c.bf16 %v3915_v10, %v3915_v10 }
 0x1ad   :  { %1918 = vst.msk [vmem:[#allocation7 + $0x1cc] sm:$0xf] %vm1802_vm2, %v3007_v62  ;;  %v3010_v37 = vpack.c.bf16 %v3927_v53, %v3927_v53  ;;  %v2474_v4 = vsel %vm1931_vm3, %v2270_v24, 0.0  ;;  %v2089_v51 = vsel %vm1931_vm3, %v3675_v36, 0.0 }
 0x1ae   :  { %v2080_v16 = vadd.f32 %v2079_v39, %v2078_v29  ;;  %v2467_v6 = vadd.f32 %v2466_v30, %v2465_v0  ;;  %1916 = vst.msk [vmem:[#allocation7 + $0x1c4] sm:$0xf] %vm1802_vm2, %v3005_v46  ;;  %v2272_v29 = vmul.f32 %v3675_v36, %v3675_v36  ;;  %v3008_v30 = vpack.c.bf16 %v3932_v13, %v3932_v13 }
 0x1af   :  { %1921 = vst.msk [vmem:[#allocation7 + $0x1d8] sm:$0xf] %vm1802_vm2, %v3010_v37  ;;  %v3014_v36 = vpack.c.bf16 %v3953_v57, %v3953_v57 }
 0x1b0   :  { %v2469_v21 = vadd.f32 %v2468_v28, %v2467_v6  ;;  %v2082_v44 = vadd.f32 %v2081_v20, %v2080_v16  ;;  %v3011_v16 = vpack.c.bf16 %v4489_v27, %v4489_v27  ;;  %v2476_v6 = vsel %vm1931_vm3, %v2271_v32, 0.0  ;;  %1919 = vst.msk [vmem:[#allocation7 + $0x1d0] sm:$0xf] %vm1802_vm2, %v3008_v30  ;;  %v4490_v20 = vld [vmem:[#allocation28_spill] sm:$0xff] }
 0x1b1   :  { %v2091_v28 = vsel %vm1931_vm3, %v3698_v11, 0.0  ;;  %1925 = vst.msk [vmem:[#allocation7 + $0x1e8] sm:$0xf] %vm1802_vm2, %v3014_v36 }
 0x1b2   :  { %v2084_v33 = vadd.f32 %v2083_v5, %v2082_v44  ;;  %v2471_v58 = vadd.f32 %v2470_v59, %v2469_v21  ;;  %v3009_v5 = vpack.c.bf16 %v4490_v20, %v4490_v20  ;;  %1922 = vst.msk [vmem:[#allocation7 + $0x1dc] sm:$0xf] %vm1802_vm2, %v3011_v16  ;;  %v2478_v44 = vsel %vm1931_vm3, %v2272_v29, 0.0 }
 0x1b3   :  { %v2480_v59 = vsel %vm1931_vm3, %v2273_v41, 0.0  ;;  %v4494_v41 = vld [vmem:[#allocation19_spill] sm:$0xff] }
 0x1b4   :  { %v2473_v39 = vadd.f32 %v2472_v43, %v2471_v58  ;;  %v2086_v0 = vadd.f32 %v2085_v49, %v2084_v33  ;;  %v4491_v43 = vld [vmem:[#allocation17_spill] sm:$0xff]  ;;  %1920 = vst.msk [vmem:[#allocation7 + $0x1d4] sm:$0xf] %vm1802_vm2, %v3009_v5  ;;  %v3012_v33 = vpack.c.bf16 %v3958_v48, %v3958_v48  ;;  %v4492_v58 = vld [vmem:[#allocation15_spill] sm:$0xff]  ;;  %v3015_v49 = vpack.c.bf16 %v3963_v60, %v3963_v60 }
 0x1b5   :  { %v2274_v24 = vmul.f32 %v4491_v43, %v4491_v43  ;;  %v2275_v46 = vmul.f32 %v4492_v58, %v4492_v58  ;;  %v2093_v32 = vsel %vm1931_vm3, %v4491_v43, 0.0  ;;  %v2095_v37 = vsel %vm1931_vm3, %v4492_v58, 0.0 }
 0x1b6   :  { %v2088_v3 = vadd.f32 %v2087_v52, %v2086_v0  ;;  %v2475_v56 = vadd.f32 %v2474_v4, %v2473_v39  ;;  %1923 = vst.msk [vmem:[#allocation7 + $0x1e0] sm:$0xf] %vm1802_vm2, %v3012_v33  ;;  %v4493_v0 = vld [vmem:[#allocation16_spill] sm:$0xff]  ;;  %v2277_v30 = vmul.f32 %v4494_v41, %v4494_v41  ;;  %1926 = vst.msk [vmem:[#allocation7 + $0x1ec] sm:$0xf] %vm1802_vm2, %v3015_v49  ;;  %v2099_v5 = vsel %vm1931_vm3, %v4494_v41, 0.0 }
 0x1b7   :  { %v2276_v29 = vmul.f32 %v4493_v0, %v4493_v0  ;;  %v2482_v4 = vsel %vm1931_vm3, %v2274_v24, 0.0  ;;  %v4495_v24 = vld [vmem:[#allocation21_spill] sm:$0xff]  ;;  %v3017_v58 = vpack.c.bf16 %v4014_v47, %v4014_v47  ;;  %v4498_v41 = vld [vmem:[#allocation23_spill] sm:$0xff] }
 0x1b8   :  { %v2477_v54 = vadd.f32 %v2476_v6, %v2475_v56  ;;  %v2090_v21 = vadd.f32 %v2089_v51, %v2088_v3  ;;  %v3013_v3 = vpack.c.bf16 %v3969_v26, %v3969_v26  ;;  %v3018_v6 = vpack.c.bf16 %v3990_v63, %v3990_v63 }
 0x1b9   :  { %v2484_v51 = vsel %vm1931_vm3, %v2275_v46, 0.0  ;;  %v2488_v43 = vsel %vm1931_vm3, %v2277_v30, 0.0  ;;  %v2278_v36 = vmul.f32 %v4495_v24, %v4495_v24  ;;  %v4496_v46 = vld [vmem:[#allocation18_spill] sm:$0xff]  ;;  %v2101_v49 = vsel %vm1931_vm3, %v4495_v24, 0.0  ;;  %1928 = vst.msk [vmem:[#allocation7 + $0x1f4] sm:$0xf] %vm1802_vm2, %v3017_v58 }
 0x1ba   :  { %v2092_v11 = vadd.f32 %v2091_v28, %v2090_v21  ;;  %v2479_v62 = vadd.f32 %v2478_v44, %v2477_v54  ;;  %v2097_v28 = vsel %vm1931_vm3, %v4493_v0, 0.0  ;;  %1924 = vst.msk [vmem:[#allocation7 + $0x1e4] sm:$0xf] %vm1802_vm2, %v3013_v3  ;;  %v3016_v54 = vpack.c.bf16 %v3999_v22, %v3999_v22  ;;  %1929 = vst.msk [vmem:[#allocation7 + $0x1f8] sm:$0xf] %vm1802_vm2, %v3018_v6  ;;  %v4497_v0 = vld [vmem:[#allocation20_spill] sm:$0xff] }
 0x1bb   :  { %v2281_v30 = vmul.f32 %v4498_v41, %v4498_v41 }
 0x1bc   :  { %v2481_v52 = vadd.f32 %v2480_v59, %v2479_v62  ;;  %v2094_v39 = vadd.f32 %v2093_v32, %v2092_v11  ;;  %v2486_v59 = vsel %vm1931_vm3, %v2276_v29, 0.0  ;;  %1927 = vst.msk [vmem:[#allocation7 + $0x1f0] sm:$0xf] %vm1802_vm2, %v3016_v54  ;;  %v3019_v11 = vpack.c.bf16 %v4004_v14, %v4004_v14 }
 0x1bd   :  { %v2279_v32 = vmul.f32 %v4496_v46, %v4496_v46  ;;  %v2280_v29 = vmul.f32 %v4497_v0, %v4497_v0 }
 0x1be   :  { %v2096_v56 = vadd.f32 %v2095_v37, %v2094_v39  ;;  %v2483_v16 = vadd.f32 %v2482_v4, %v2481_v52  ;;  %1930 = vst.msk [vmem:[#allocation7 + $0x1fc] sm:$0xf] %vm1802_vm2, %v3019_v11  ;;  %v2103_v39 = vsel %vm1931_vm3, %v4496_v46, 0.0  ;;  %v2490_v4 = vsel %vm1931_vm3, %v2278_v36, 0.0 }
 0x1c0   :  { %v2485_v21 = vadd.f32 %v2484_v51, %v2483_v16  ;;  %v2098_v44 = vadd.f32 %v2097_v28, %v2096_v56 }
 0x1c2   :  { %v2100_v62 = vadd.f32 %v2099_v5, %v2098_v44  ;;  %v2487_v33 = vadd.f32 %v2486_v59, %v2485_v21 }
 0x1c4   :  { %v2489_v37 = vadd.f32 %v2488_v43, %v2487_v33  ;;  %v2102_v52 = vadd.f32 %v2101_v49, %v2100_v62 }
 0x1c5   :  { %3382 = shalt.err (!%p3379_p6)
}
 0x1c6   :  { %s3383_s18 = scalar_lea.hbm %s4446_s2, 8192 }
 0x1c7   :  { %p3384_p7 = scmp.ne.s32.totalorder %s4446_s2, %s3383_s18  ;;  %p3387_p8 = scmp.lt.u32.totalorder %s3383_s18, %s4446_s2 }
 0x1c9   :  { %p3389_p9 = pnand %p3387_p8, %p3384_p7 }
 0x1cb   :  { %3392 = shalt.err (!%p3389_p9)
}
 0x1cc   :  { %2595 = dma.vmem_to_hbm [thread:$0]  %s2590_s14, 8192, %s4446_s2, [#allocation4], %s3446_s25, %s3446_s25, %s3447_s26   ;;  %v2104_v3 = vadd.f32 %v2103_v39, %v2102_v52  ;;  %v2491_v56 = vadd.f32 %v2490_v4, %v2489_v37  ;;  %v2492_v16 = vsel %vm1931_vm3, %v2279_v32, 0.0  ;;  %v2105_v6 = vsel %vm1931_vm3, %v4497_v0, 0.0  ;;  %v4499_v44 = vld [vmem:[#allocation25_spill] sm:$0xff]  ;;  %v4500_v36 = vld [vmem:[#allocation22_spill] sm:$0xff] }
 0x1cd   :  { %v2107_v51 = vsel %vm1931_vm3, %v4498_v41, 0.0  ;;  %v2494_v54 = vsel %vm1931_vm3, %v2280_v29, 0.0  ;;  %v2496_v21 = vsel %vm1931_vm3, %v2281_v30, 0.0  ;;  %v2282_v59 = vmul.f32 %v4499_v44, %v4499_v44  ;;  %v4501_v32 = vld [vmem:[#allocation24_spill] sm:$0xff]  ;;  %s3450_s2 = smov [#allocation8]   ;;  %s3451_s26 = smov [#allocation10]  }
 0x1ce   :  { %v2493_v28 = vadd.f32 %v2492_v16, %v2491_v56  ;;  %v2106_v5 = vadd.f32 %v2105_v6, %v2104_v3  ;;  %v2283_v11 = vmul.f32 %v4500_v36, %v4500_v36  ;;  %v2109_v62 = vsel %vm1931_vm3, %v4499_v44, 0.0  ;;  %s2602_s25 = sshll.u32 %s3450_s2, 4  ;;  %s2612_s27 = sshll.u32 %s3451_s26, 4  ;;  %s2603_s25 = int_to_ptr.vmem [resolvable:$true] %s2602_s25  ;;  %s2613_s27 = int_to_ptr.vmem [resolvable:$true] %s2612_s27 }
 0x1cf   :  { %v2111_v46 = vsel %vm1931_vm3, %v4500_v36, 0.0  ;;  %v2284_v49 = vmul.f32 %v4501_v32, %v4501_v32  ;;  %v2498_v37 = vsel %vm1931_vm3, %v2282_v59, 0.0  ;;  %v2285_v52 = vmul.f32 %v3776_v35, %v3776_v35  ;;  %s3393_s28 = scalar_lea.vmem %s2603_s25, 128  ;;  %p3398_p11 = scmp.lt.s32.totalorder %s2603_s25, %s2603_s25 }
 0x1d0   :  { %v2108_v43 = vadd.f32 %v2107_v51, %v2106_v5  ;;  %v2495_v24 = vadd.f32 %v2494_v54, %v2493_v28  ;;  %v2500_v29 = vsel %vm1931_vm3, %v2283_v11, 0.0  ;;  %v2113_v4 = vsel %vm1931_vm3, %v4501_v32, 0.0  ;;  %v4502_v5 = vld [vmem:[#allocation26_spill] sm:$0xff]  ;;  %p3394_p10 = scmp.ne.s32.totalorder %s2603_s25, %s3393_s28  ;;  %p3399_p12 = scmp.lt.s32.totalorder %s3393_s28, %s3393_s28 }
 0x1d1   :  { %v2115_v41 = vsel %vm1931_vm3, %v3776_v35, 0.0  ;;  %v2502_v56 = vsel %vm1931_vm3, %v2284_v49, 0.0  ;;  %v2504_v16 = vsel %vm1931_vm3, %v2285_v52, 0.0  ;;  %v2286_v6 = vmul.f32 %v3785_v50, %v3785_v50 }
 0x1d2   :  { %v2497_v33 = vadd.f32 %v2496_v21, %v2495_v24  ;;  %v2110_v58 = vadd.f32 %v2109_v62, %v2108_v43  ;;  %v2287_v54 = vmul.f32 %v4502_v5, %v4502_v5  ;;  %v2117_v21 = vsel %vm1931_vm3, %v3785_v50, 0.0  ;;  %p3400_p13 = por %p3399_p12, %p3398_p11 }
 0x1d3   :  { %v2119_v35 = vsel %vm1931_vm3, %v4502_v5, 0.0  ;;  %v2288_v43 = vmul.f32 %v3779_v40, %v3779_v40  ;;  %v2506_v24 = vsel %vm1931_vm3, %v2286_v6, 0.0  ;;  %v2289_v36 = vmul.f32 %v3802_v34, %v3802_v34 }
 0x1d4   :  { %v2112_v39 = vadd.f32 %v2111_v46, %v2110_v58  ;;  %v2499_v0 = vadd.f32 %v2498_v37, %v2497_v33  ;;  %v2508_v33 = vsel %vm1931_vm3, %v2287_v54, 0.0  ;;  %v2121_v50 = vsel %vm1931_vm3, %v3779_v40, 0.0  ;;  %p3401_p0 = pnand %p3400_p13, %p3394_p10 }
 0x1d5   :  { %v2123_v58 = vsel %vm1931_vm3, %v3802_v34, 0.0  ;;  %v2510_v49 = vsel %vm1931_vm3, %v2288_v43, 0.0  ;;  %v2512_v37 = vsel %vm1931_vm3, %v2289_v36, 0.0  ;;  %v2290_v52 = vmul.f32 %v3811_v55, %v3811_v55 }
 0x1d6   :  { %v2501_v30 = vadd.f32 %v2500_v29, %v2499_v0  ;;  %v2114_v3 = vadd.f32 %v2113_v4, %v2112_v39  ;;  %v2291_v29 = vmul.f32 %v3797_v25, %v3797_v25  ;;  %v2125_v40 = vsel %vm1931_vm3, %v3811_v55, 0.0 }
 0x1d7   :  { %v2127_v34 = vsel %vm1931_vm3, %v3797_v25, 0.0  ;;  %v2129_v55 = vsel %vm1931_vm3, %v3805_v42, 0.0  ;;  %v2295_v43 = vmul.f32 %v3823_v31, %v3823_v31 }
 0x1d8   :  { %v2116_v51 = vadd.f32 %v2115_v41, %v2114_v3  ;;  %v2503_v28 = vadd.f32 %v2502_v56, %v2501_v30  ;;  %v2292_v30 = vmul.f32 %v3805_v42, %v3805_v42  ;;  %v2514_v3 = vsel %vm1931_vm3, %v2290_v52, 0.0 }
 0x1d9   :  { %v2293_v56 = vmul.f32 %v3828_v45, %v3828_v45  ;;  %v2133_v42 = vsel %vm1931_vm3, %v3837_v8, 0.0 }
 0x1da   :  { %v2505_v44 = vadd.f32 %v2504_v16, %v2503_v28  ;;  %v2118_v59 = vadd.f32 %v2117_v21, %v2116_v51  ;;  %v2516_v51 = vsel %vm1931_vm3, %v2291_v29, 0.0  ;;  %v2131_v28 = vsel %vm1931_vm3, %v3828_v45, 0.0 }
 0x1db   :  { %v2518_v54 = vsel %vm1931_vm3, %v2292_v30, 0.0  ;;  %v2520_v21 = vsel %vm1931_vm3, %v2293_v56, 0.0  ;;  %v2135_v45 = vsel %vm1931_vm3, %v3823_v31, 0.0 }
 0x1dc   :  { %v2120_v11 = vadd.f32 %v2119_v35, %v2118_v59  ;;  %v2507_v62 = vadd.f32 %v2506_v24, %v2505_v44  ;;  %v2294_v44 = vmul.f32 %v3837_v8, %v3837_v8  ;;  %v2137_v8 = vsel %vm1931_vm3, %v3831_v61, 0.0 }
 0x1de   :  { %v2509_v46 = vadd.f32 %v2508_v33, %v2507_v62  ;;  %v2122_v32 = vadd.f32 %v2121_v50, %v2120_v11  ;;  %v2296_v11 = vmul.f32 %v3831_v61, %v3831_v61  ;;  %v2522_v62 = vsel %vm1931_vm3, %v2294_v44, 0.0 }
 0x1df   :  { %v2297_v33 = vmul.f32 %v3854_v9, %v3854_v9  ;;  %v2141_v61 = vsel %vm1931_vm3, %v3863_v12, 0.0  ;;  %v2303_v44 = vmul.f32 %v3875_v38, %v3875_v38 }
 0x1e0   :  { %v2124_v39 = vadd.f32 %v2123_v58, %v2122_v32  ;;  %v2511_v0 = vadd.f32 %v2510_v49, %v2509_v46  ;;  %v2524_v46 = vsel %vm1931_vm3, %v2295_v43, 0.0  ;;  %v2139_v32 = vsel %vm1931_vm3, %v3854_v9, 0.0 }
 0x1e1   :  { %v2528_v52 = vsel %vm1931_vm3, %v2297_v33, 0.0  ;;  %v2143_v9 = vsel %vm1931_vm3, %v3849_v1, 0.0  ;;  %v2304_v43 = vmul.f32 %v3883_v7, %v3883_v7 }
 0x1e2   :  { %v2513_v4 = vadd.f32 %v2512_v37, %v2511_v0  ;;  %v2126_v41 = vadd.f32 %v2125_v40, %v2124_v39  ;;  %v2526_v37 = vsel %vm1931_vm3, %v2296_v11, 0.0  ;;  %v2298_v39 = vmul.f32 %v3863_v12, %v3863_v12 }
 0x1e3   :  { %v2299_v40 = vmul.f32 %v3849_v1, %v3849_v1  ;;  %v2145_v12 = vsel %vm1931_vm3, %v3857_v19, 0.0  ;;  %v2540_v11 = vsel %vm1931_vm3, %v2303_v44, 0.0 }
 0x1e4   :  { %v2128_v16 = vadd.f32 %v2127_v34, %v2126_v41  ;;  %v2515_v6 = vadd.f32 %v2514_v3, %v2513_v4  ;;  %v2300_v34 = vmul.f32 %v3857_v19, %v3857_v19  ;;  %v2530_v30 = vsel %vm1931_vm3, %v2298_v39, 0.0 }
 0x1e5   :  { %v2301_v3 = vmul.f32 %v3880_v18, %v3880_v18  ;;  %v2149_v19 = vsel %vm1931_vm3, %v3889_v17, 0.0 }
 0x1e6   :  { %v2517_v5 = vadd.f32 %v2516_v51, %v2515_v6  ;;  %v2130_v25 = vadd.f32 %v2129_v55, %v2128_v16  ;;  %v2532_v6 = vsel %vm1931_vm3, %v2299_v40, 0.0  ;;  %v2147_v51 = vsel %vm1931_vm3, %v3880_v18, 0.0 }
 0x1e7   :  { %v2151_v18 = vsel %vm1931_vm3, %v3875_v38, 0.0 }
 0x1e8   :  { %v2132_v59 = vadd.f32 %v2131_v28, %v2130_v25  ;;  %v2519_v35 = vadd.f32 %v2518_v54, %v2517_v5  ;;  %v2534_v28 = vsel %vm1931_vm3, %v2300_v34, 0.0  ;;  %v2536_v5 = vsel %vm1931_vm3, %v2301_v3, 0.0 }
 0x1e9   :  { %v2302_v25 = vmul.f32 %v3889_v17, %v3889_v17  ;;  %v2153_v17 = vsel %vm1931_vm3, %v3883_v7, 0.0  ;;  %v2157_v7 = vsel %vm1931_vm3, %v3915_v10, 0.0 }
 0x1ea   :  { %v2521_v24 = vadd.f32 %v2520_v21, %v2519_v35  ;;  %v2134_v36 = vadd.f32 %v2133_v42, %v2132_v59 }
 0x1eb   :  { %v2538_v42 = vsel %vm1931_vm3, %v2302_v25, 0.0 }
 0x1ec   :  { %v2136_v50 = vadd.f32 %v2135_v45, %v2134_v36  ;;  %v2523_v58 = vadd.f32 %v2522_v62, %v2521_v24  ;;  %v2305_v24 = vmul.f32 %v3906_v23, %v3906_v23  ;;  %v2155_v62 = vsel %vm1931_vm3, %v3906_v23, 0.0 }
 0x1ed   :  { %v2159_v23 = vsel %vm1931_vm3, %v3901_v15, 0.0 }
 0x1ee   :  { %v2525_v49 = vadd.f32 %v2524_v46, %v2523_v58  ;;  %v2138_v31 = vadd.f32 %v2137_v8, %v2136_v50  ;;  %v2542_v50 = vsel %vm1931_vm3, %v2304_v43, 0.0  ;;  %v2544_v58 = vsel %vm1931_vm3, %v2305_v24, 0.0 }
 0x1ef   :  { %v2306_v46 = vmul.f32 %v3915_v10, %v3915_v10  ;;  %v2161_v10 = vsel %vm1931_vm3, %v3909_v2, 0.0  ;;  %v2315_v43 = vmul.f32 %v3953_v57, %v3953_v57 }
 0x1f0   :  { %v2140_v0 = vadd.f32 %v2139_v32, %v2138_v31  ;;  %v2527_v29 = vadd.f32 %v2526_v37, %v2525_v49  ;;  %v2307_v49 = vmul.f32 %v3901_v15, %v3901_v15 }
 0x1f1   :  { %v2546_v39 = vsel %vm1931_vm3, %v2306_v46, 0.0 }
 0x1f2   :  { %v2529_v4 = vadd.f32 %v2528_v52, %v2527_v29  ;;  %v2142_v41 = vadd.f32 %v2141_v61, %v2140_v0  ;;  %v2308_v52 = vmul.f32 %v3909_v2, %v3909_v2  ;;  %v2309_v0 = vmul.f32 %v3932_v13, %v3932_v13 }
 0x1f3   :  { %v2548_v61 = vsel %vm1931_vm3, %v2307_v49, 0.0  ;;  %v2165_v2 = vsel %vm1931_vm3, %v4490_v20, 0.0 }
 0x1f4   :  { %v2144_v56 = vadd.f32 %v2143_v9, %v2142_v41  ;;  %v2531_v16 = vadd.f32 %v2530_v30, %v2529_v4  ;;  %v2163_v4 = vsel %vm1931_vm3, %v3932_v13, 0.0  ;;  %v2550_v9 = vsel %vm1931_vm3, %v2308_v52, 0.0 }
 0x1f5   :  { %v2552_v34 = vsel %vm1931_vm3, %v2309_v0, 0.0  ;;  %v2310_v30 = vmul.f32 %v4490_v20, %v4490_v20  ;;  %v2167_v13 = vsel %vm1931_vm3, %v3927_v53, 0.0  ;;  %v2169_v20 = vsel %vm1931_vm3, %v4489_v27, 0.0 }
 0x1f6   :  { %v2533_v55 = vadd.f32 %v2532_v6, %v2531_v16  ;;  %v2146_v1 = vadd.f32 %v2145_v12, %v2144_v56  ;;  %v2311_v16 = vmul.f32 %v3927_v53, %v3927_v53 }
 0x1f8   :  { %v2148_v54 = vadd.f32 %v2147_v51, %v2146_v1  ;;  %v2535_v21 = vadd.f32 %v2534_v28, %v2533_v55  ;;  %v2312_v51 = vmul.f32 %v4489_v27, %v4489_v27  ;;  %v2554_v55 = vsel %vm1931_vm3, %v2310_v30, 0.0 }
 0x1f9   :  { %v2313_v1 = vmul.f32 %v3958_v48, %v3958_v48  ;;  %v2556_v25 = vsel %vm1931_vm3, %v2311_v16, 0.0  ;;  %v2173_v27 = vsel %vm1931_vm3, %v3969_v26, 0.0 }
 0x1fa   :  { %v2537_v59 = vadd.f32 %v2536_v5, %v2535_v21  ;;  %v2150_v35 = vadd.f32 %v2149_v19, %v2148_v54  ;;  %v2171_v54 = vsel %vm1931_vm3, %v3958_v48, 0.0  ;;  %v2558_v44 = vsel %vm1931_vm3, %v2312_v51, 0.0 }
 0x1fb   :  { %v2560_v19 = vsel %vm1931_vm3, %v2313_v1, 0.0  ;;  %v2175_v48 = vsel %vm1931_vm3, %v3953_v57, 0.0 }
 0x1fc   :  { %v2152_v36 = vadd.f32 %v2151_v18, %v2150_v35  ;;  %v2539_v45 = vadd.f32 %v2538_v42, %v2537_v59  ;;  %v2314_v59 = vmul.f32 %v3969_v26, %v3969_v26  ;;  %v2177_v26 = vsel %vm1931_vm3, %v3963_v60, 0.0 }
 0x1fe   :  { %v2541_v33 = vadd.f32 %v2540_v11, %v2539_v45  ;;  %v2154_v38 = vadd.f32 %v2153_v17, %v2152_v36  ;;  %v2316_v36 = vmul.f32 %v3963_v60, %v3963_v60  ;;  %v2562_v45 = vsel %vm1931_vm3, %v2314_v59, 0.0 }
 0x1ff   :  { %v2317_v11 = vmul.f32 %v3999_v22, %v3999_v22  ;;  %v2181_v60 = vsel %vm1931_vm3, %v4014_v47, 0.0 }
 0x200   :  { %v2156_v8 = vadd.f32 %v2155_v62, %v2154_v38  ;;  %v2543_v32 = vadd.f32 %v2542_v50, %v2541_v33  ;;  %v2564_v33 = vsel %vm1931_vm3, %v2315_v43, 0.0  ;;  %v2179_v38 = vsel %vm1931_vm3, %v3999_v22, 0.0 }
 0x201   :  { %v2568_v46 = vsel %vm1931_vm3, %v2317_v11, 0.0  ;;  %v2183_v22 = vsel %vm1931_vm3, %v3990_v63, 0.0 }
 0x202   :  { %v2545_v31 = vadd.f32 %v2544_v58, %v2543_v32  ;;  %v2158_v37 = vadd.f32 %v2157_v7, %v2156_v8  ;;  %v2566_v58 = vsel %vm1931_vm3, %v2316_v36, 0.0  ;;  %v2318_v8 = vmul.f32 %v4014_v47, %v4014_v47 }
 0x203   :  { %v2319_v7 = vmul.f32 %v3990_v63, %v3990_v63 }
 0x204   :  { %v2160_v29 = vadd.f32 %v2159_v23, %v2158_v37  ;;  %v2547_v40 = vadd.f32 %v2546_v39, %v2545_v31  ;;  %v2320_v23 = vmul.f32 %v4004_v14, %v4004_v14  ;;  %v2570_v52 = vsel %vm1931_vm3, %v2318_v8, 0.0 }
 0x206   :  { %v2549_v41 = vadd.f32 %v2548_v61, %v2547_v40  ;;  %v2162_v15 = vadd.f32 %v2161_v10, %v2160_v29  ;;  %v2572_v29 = vsel %vm1931_vm3, %v2319_v7, 0.0  ;;  %v2185_v40 = vsel %vm1931_vm3, %v4004_v14, 0.0 }
 0x207   :  { %v2574_v47 = vsel %vm1931_vm3, %v2320_v23, 0.0 }
 0x208   :  { %v2164_v3 = vadd.f32 %v2163_v4, %v2162_v15  ;;  %v2551_v56 = vadd.f32 %v2550_v9, %v2549_v41 }
 0x20a   :  { %v2553_v6 = vadd.f32 %v2552_v34, %v2551_v56  ;;  %v2166_v12 = vadd.f32 %v2165_v2, %v2164_v3 }
 0x20c   :  { %v2168_v28 = vadd.f32 %v2167_v13, %v2166_v12  ;;  %v2555_v5 = vadd.f32 %v2554_v55, %v2553_v6 }
 0x20e   :  { %v2557_v21 = vadd.f32 %v2556_v25, %v2555_v5  ;;  %v2170_v53 = vadd.f32 %v2169_v20, %v2168_v28 }
 0x210   :  { %v2172_v35 = vadd.f32 %v2171_v54, %v2170_v53  ;;  %v2559_v18 = vadd.f32 %v2558_v44, %v2557_v21 }
 0x212   :  { %v2561_v42 = vadd.f32 %v2560_v19, %v2559_v18  ;;  %v2174_v24 = vadd.f32 %v2173_v27, %v2172_v35 }
 0x214   :  { %v2176_v17 = vadd.f32 %v2175_v48, %v2174_v24  ;;  %v2563_v62 = vadd.f32 %v2562_v45, %v2561_v42 }
 0x216   :  { %v2565_v50 = vadd.f32 %v2564_v33, %v2563_v62  ;;  %v2178_v57 = vadd.f32 %v2177_v26, %v2176_v17 }
 0x218   :  { %v2180_v32 = vadd.f32 %v2179_v38, %v2178_v57  ;;  %v2567_v49 = vadd.f32 %v2566_v58, %v2565_v50 }
 0x21a   :  { %v2569_v31 = vadd.f32 %v2568_v46, %v2567_v49  ;;  %v2182_v37 = vadd.f32 %v2181_v60, %v2180_v32 }
 0x21c   :  { %v2184_v39 = vadd.f32 %v2183_v22, %v2182_v37  ;;  %v2571_v0 = vadd.f32 %v2570_v52, %v2569_v31 }
 0x21e   :  { %v2186_v61 = vadd.f32 %v2185_v40, %v2184_v39  ;;  %v2573_v10 = vadd.f32 %v2572_v29, %v2571_v0 }
 0x220   :  { %v2187_v4 = vrot.slane %v2186_v61, 4  ;;  %v2575_v41 = vadd.f32 %v2574_v47, %v2573_v10 }
 0x222   :  { %v2188_v15 = vadd.f32 %v2187_v4, %v2186_v61  ;;  %v2576_v63 = vrot.slane %v2575_v41, 4 }
 0x224   :  { %v2577_v9 = vadd.f32 %v2576_v63, %v2575_v41  ;;  %v2189_v34 = vrot.slane %v2188_v15, 2 }
 0x226   :  { %v2190_v30 = vadd.f32 %v2189_v34, %v2188_v15  ;;  %v2578_v3 = vrot.slane %v2577_v9, 2 }
 0x228   :  { %v2191_v56 = vrot.slane %v2190_v30, 1  ;;  %v2579_v16 = vadd.f32 %v2578_v3, %v2577_v9 }
 0x22a   :  { %v2192_v2 = vadd.f32 %v2191_v56, %v2190_v30  ;;  %v2580_v14 = vrot.slane %v2579_v16, 1 }
 0x22c   :  { %2582 = vst.msk [vmem:[#allocation8] sm:$0xff] %vm1931_vm3, %v2192_v2  ;;  %v2581_v6 = vadd.f32 %v2580_v14, %v2579_v16 }
 0x22d   :  { %3404 = shalt.err (!%p3401_p0)
}
 0x22e   :  { %s3405_s5 = scalar_lea.hbm %s4447_s3, 128 }
 0x22f   :  { %p3406_p1 = scmp.ne.s32.totalorder %s4447_s3, %s3405_s5  ;;  %p3409_p2 = scmp.lt.u32.totalorder %s3405_s5, %s4447_s3 }
 0x231   :  { %p3411_p3 = pnand %p3409_p2, %p3406_p1 }
 0x233   :  { %3414 = shalt.err (!%p3411_p3)
}
 0x234   :  { %2605 = dma.vmem_to_hbm [thread:$0]  %s2603_s25, 128, %s4447_s3, [#allocation9]   ;;  %2583 = vst.msk [vmem:[#allocation10] sm:$0xff] %vm1931_vm3, %v2581_v6 }
 0x235   :  { %s3415_s12 = scalar_lea.vmem %s2613_s27, 128  ;;  %p3420_p5 = scmp.lt.s32.totalorder %s2613_s27, %s2613_s27 }
 0x236   :  { %p3416_p4 = scmp.ne.s32.totalorder %s2613_s27, %s3415_s12  ;;  %p3421_p6 = scmp.lt.s32.totalorder %s3415_s12, %s3415_s12 }
 0x238   :  { %p3422_p7 = por %p3421_p6, %p3420_p5 }
 0x23a   :  { %p3423_p8 = pnand %p3422_p7, %p3416_p4 }
 0x23c   :  { %3426 = shalt.err (!%p3423_p8)
}
 0x23d   :  { %s3427_s1 = scalar_lea.hbm %s4448_s4, 128 }
 0x23e   :  { %p3428_p9 = scmp.ne.s32.totalorder %s4448_s4, %s3427_s1  ;;  %p3431_p10 = scmp.lt.u32.totalorder %s3427_s1, %s4448_s4 }
 0x240   :  { %p3433_p11 = pnand %p3431_p10, %p3428_p9 }
 0x242   :  { %3436 = shalt.err (!%p3433_p11)
}
 0x243   :  { %2615 = dma.vmem_to_hbm [thread:$0]  %s2613_s27, 128, %s4448_s4, [#allocation9]  }
 0x244   :  { %3441 = dma.done.wait [#allocation4], 8192  }
 0x245   :  { %3442 = vsyncadd [#allocation4], 4294959104 }
 0x246   :  { %3443 = dma.done.wait [#allocation9], 256  }
 0x247   :  { %3444 = vsyncadd [#allocation9], 4294967040 }
 0x248   :  { %2625 = vsyncpa [#allocation3], 1 }
 0x249   :  { %2626 = vsyncpa [#allocation6], 1 }
 0x24a   :  { %2627 = vsyncpa [#allocation4], 1 }
 0x24b   :  { %2628 = vsyncpa [#allocation9], 1 }

// kernel: _basic_block_forward.5
= control target key start
LH: loop header
LB: loop body
LE: loop exit
PB: predicated region body
PF: predicated region fallthrough
CT: control target
= control target key end

     0   :  { %8 = vsyncpa [#allocation3], 0  ;;  %s341_s0 = inlined_call_operand.hbm [shape: bf16[32,128], index: 0, kind: input, shape index: {}, may-alias: {0,3}]   ;;  %s342_s1 = inlined_call_operand.hbm [shape: f32[1,128], index: 1, kind: input, shape index: {}]   ;;  %s343_s2 = inlined_call_operand.hbm [shape: f32[1,128], index: 2, kind: input, shape index: {}]   ;;  %s344_s3 = inlined_call_operand.hbm [shape: bf16[32,128], index: 3, kind: output, shape index: {}, may-alias: {0,3}]  }
   0x1   :  { %9 = vsyncpa [#allocation6], 0 }
   0x2   :  { %10 = vsyncpa [#allocation4], 0  ;;  %s254_s12 = smov [#allocation5]   ;;  %s255_s14 = smov [#allocation2]  }
   0x3   :  { %s29_s13 = sshll.u32 %s254_s12, 4  ;;  %s16_s15 = sshll.u32 %s255_s14, 4  ;;  %s30_s13 = int_to_ptr.vmem [resolvable:$true] %s29_s13  ;;  %s280_s15 = int_to_ptr.vmem [resolvable:$true] %s16_s15 }
   0x4   :  { %s160_s18 = scalar_lea.hbm %s342_s1, 16 }
   0x5   :  { %p161_p0 = scmp.ne.s32.totalorder %s342_s1, %s160_s18  ;;  %p164_p1 = scmp.lt.u32.totalorder %s160_s18, %s342_s1 }
   0x7   :  { %p166_p2 = pnand %p164_p1, %p161_p0 }
   0x9   :  { %169 = shalt.err (!%p166_p2)
}
   0xa   :  { %s170_s23 = scalar_lea.vmem %s30_s13, 16  ;;  %s174_s24 = scalar_lea.vmem %s30_s13, 32 }
   0xb   :  { %p171_p3 = scmp.ne.s32.totalorder %s30_s13, %s170_s23  ;;  %p175_p4 = scmp.lt.s32.totalorder %s30_s13, %s30_s13 }
   0xc   :  { %p176_p5 = scmp.lt.s32.totalorder %s174_s24, %s170_s23 }
   0xe   :  { %p177_p6 = por %p176_p5, %p175_p4 }
  0x10   :  { %p178_p7 = pnand %p177_p6, %p171_p3 }
  0x12   :  { %181 = shalt.err (!%p178_p7)
}
  0x13   :  { %32 = dma.hbm_to_vmem [thread:$0]  %s342_s1, 16, %s30_s13, [#allocation6]  }
  0x14   :  { %s182_s29 = scalar_lea.hbm %s341_s0, 256 }
  0x15   :  { %p183_p8 = scmp.ne.s32.totalorder %s341_s0, %s182_s29  ;;  %p186_p9 = scmp.lt.u32.totalorder %s182_s29, %s341_s0 }
  0x17   :  { %p188_p10 = pnand %p186_p9, %p183_p8 }
  0x19   :  { %191 = shalt.err (!%p188_p10)
}
  0x1a   :  { %s192_s7 = scalar_lea.vmem %s280_s15, 256  ;;  %p197_p12 = scmp.lt.s32.totalorder %s280_s15, %s280_s15 }
  0x1b   :  { %p193_p11 = scmp.ne.s32.totalorder %s280_s15, %s192_s7  ;;  %p198_p13 = scmp.lt.s32.totalorder %s192_s7, %s192_s7 }
  0x1d   :  { %p199_p0 = por %p198_p13, %p197_p12 }
  0x1f   :  { %p200_p1 = pnand %p199_p0, %p193_p11 }
  0x21   :  { %203 = shalt.err (!%p200_p1)
}
  0x22   :  { %s256_s1 = smov 64   ;;  %s257_s8 = smov 4  }
  0x23   :  { %22 = dma.hbm_to_vmem [thread:$0]  %s341_s0, 256, %s280_s15, [#allocation3], %s256_s1, %s256_s1, %s257_s8  }
  0x24   :  { %s258_s11 = smov [#allocation7]   ;;  %s204_s16 = scalar_lea.hbm %s343_s2, 16 }
  0x25   :  { %s39_s12 = sshll.u32 %s258_s11, 4  ;;  %p205_p2 = scmp.ne.s32.totalorder %s343_s2, %s204_s16  ;;  %s40_s12 = int_to_ptr.vmem [resolvable:$true] %s39_s12 }
  0x26   :  { %p208_p3 = scmp.lt.u32.totalorder %s204_s16, %s343_s2 }
  0x28   :  { %p210_p4 = pnand %p208_p3, %p205_p2 }
  0x2a   :  { %213 = shalt.err (!%p210_p4)
}
  0x2b   :  { %s214_s21 = scalar_lea.vmem %s40_s12, 16  ;;  %s218_s0 = scalar_lea.vmem %s40_s12, 32 }
  0x2c   :  { %p215_p5 = scmp.ne.s32.totalorder %s40_s12, %s214_s21  ;;  %p219_p6 = scmp.lt.s32.totalorder %s40_s12, %s40_s12 }
  0x2d   :  { %p220_p7 = scmp.lt.s32.totalorder %s218_s0, %s214_s21 }
  0x2f   :  { %p221_p8 = por %p220_p7, %p219_p6 }
  0x31   :  { %p222_p9 = pnand %p221_p8, %p215_p5 }
  0x33   :  { %225 = shalt.err (!%p222_p9)
}
  0x34   :  { %42 = dma.hbm_to_vmem [thread:$0]  %s343_s2, 16, %s40_s12, [#allocation6]  }
  0x35   :  { %248 = dma.done.wait [#allocation3], 256  }
  0x36   :  { %249 = vsyncadd [#allocation3], 4294967040 }
  0x37   :  { %250 = dma.done.wait [#allocation6], 32  }
  0x38   :  { %251 = vsyncadd [#allocation6], 4294967264  ;;  %v135_v0 = vld [vmem:[#allocation2] sm:$0xff]   ;;  %v124_v1 = vld [vmem:[#allocation5] ss:$0 sm:$0xff]  ;;  %s259_s2 = smov [#allocation8]  }
  0x39   :  { %v136_v2 = vunpack.c.l.bf16 %v135_v0  ;;  %v137_v3 = vunpack.c.h.bf16 %v135_v0  ;;  %v152_v4 = vld [vmem:[#allocation2 + $0x8] sm:$0xff]   ;;  %v125_v5 = vld [vmem:[#allocation7] ss:$0 sm:$0xff]  ;;  %s111_s23 = sshll.u32 %s259_s2, 4  ;;  %s112_s23 = int_to_ptr.vmem [resolvable:$true] %s111_s23 }
  0x3a   :  { %v140_v6 = vunpack.c.l.bf16 %v152_v4  ;;  %v141_v7 = vunpack.c.h.bf16 %v152_v4  ;;  %s226_s24 = scalar_lea.vmem %s112_s23, 256  ;;  %p231_p11 = scmp.lt.s32.totalorder %s112_s23, %s112_s23 }
  0x3b   :  { %v67_v8 = vmul.f32 %v136_v2, %v124_v1  ;;  %v68_v9 = vmul.f32 %v137_v3, %v124_v1  ;;  %p227_p10 = scmp.ne.s32.totalorder %s112_s23, %s226_s24  ;;  %p232_p12 = scmp.lt.s32.totalorder %s226_s24, %s226_s24 }
  0x3c   :  { %v69_v10 = vmul.f32 %v140_v6, %v124_v1  ;;  %v70_v11 = vmul.f32 %v141_v7, %v124_v1 }
  0x3d   :  { %v78_v12 = vadd.f32 %v125_v5, %v67_v8  ;;  %v79_v13 = vadd.f32 %v125_v5, %v68_v9  ;;  %p233_p13 = por %p232_p12, %p231_p11 }
  0x3e   :  { %v80_v14 = vadd.f32 %v125_v5, %v69_v10  ;;  %v81_v15 = vadd.f32 %v125_v5, %v70_v11 }
  0x3f   :  { %v82_v16 = vmax.f32 %v78_v12, 0.0  ;;  %v83_v17 = vmax.f32 %v79_v13, 0.0  ;;  %p234_p0 = pnand %p233_p13, %p227_p10 }
  0x40   :  { %v84_v18 = vmax.f32 %v80_v14, 0.0  ;;  %v85_v19 = vmax.f32 %v81_v15, 0.0 }
  0x41   :  { %v145_v20 = vpack.c.bf16 %v83_v17, %v82_v16 }
  0x42   :  { %v150_v21 = vpack.c.bf16 %v85_v19, %v84_v18 }
  0x43   :  { %146 = vst [vmem:[#allocation8] sm:$0xff] %v145_v20  }
  0x44   :  { %153 = vst [vmem:[#allocation8 + $0x8] sm:$0xff] %v150_v21  }
  0x45   :  { %237 = shalt.err (!%p234_p0)
}
  0x46   :  { %s238_s27 = scalar_lea.hbm %s344_s3, 256 }
  0x47   :  { %p239_p1 = scmp.ne.s32.totalorder %s344_s3, %s238_s27  ;;  %p242_p2 = scmp.lt.u32.totalorder %s238_s27, %s344_s3 }
  0x49   :  { %p244_p3 = pnand %p242_p2, %p239_p1 }
  0x4b   :  { %247 = shalt.err (!%p244_p3)
}
  0x4c   :  { %117 = dma.vmem_to_hbm [thread:$0]  %s112_s23, 256, %s344_s3, [#allocation4], %s256_s1, %s256_s1, %s257_s8  }
  0x4d   :  { %252 = dma.done.wait [#allocation4], 256  }
  0x4e   :  { %253 = vsyncadd [#allocation4], 4294967040 }
  0x4f   :  { %121 = vsyncpa [#allocation3], 1 }
  0x50   :  { %122 = vsyncpa [#allocation6], 1 }
  0x51   :  { %123 = vsyncpa [#allocation4], 1 }

// kernel: _basic_block_forward.7
= control target key start
LH: loop header
LB: loop body
LE: loop exit
PB: predicated region body
PF: predicated region fallthrough
CT: control target
= control target key end

     0   :  { %9 = vsyncpa [#allocation3], 0  ;;  %s399_s0 = inlined_call_operand.hbm [shape: bf16[32,128], index: 0, kind: input, shape index: {}]   ;;  %s400_s1 = inlined_call_operand.hbm [shape: f32[1,128], index: 1, kind: input, shape index: {}]   ;;  %s401_s2 = inlined_call_operand.hbm [shape: f32[1,128], index: 2, kind: input, shape index: {}]   ;;  %s402_s3 = inlined_call_operand.hbm [shape: bf16[32,128], index: 3, kind: input, shape index: {}]   ;;  %s403_s4 = inlined_call_operand.hbm [shape: f32[32,128], index: 4, kind: output, shape index: {}]  }
   0x1   :  { %10 = vsyncpa [#allocation6], 0 }
   0x2   :  { %11 = vsyncpa [#allocation9], 0 }
   0x3   :  { %12 = vsyncpa [#allocation4], 0  ;;  %s285_s15 = smov [#allocation5]   ;;  %s286_s17 = smov [#allocation2]  }
   0x4   :  { %s31_s16 = sshll.u32 %s285_s15, 4  ;;  %s18_s18 = sshll.u32 %s286_s17, 4  ;;  %s32_s16 = int_to_ptr.vmem [resolvable:$true] %s31_s16  ;;  %s319_s18 = int_to_ptr.vmem [resolvable:$true] %s18_s18 }
   0x5   :  { %s167_s21 = scalar_lea.hbm %s400_s1, 16 }
   0x6   :  { %p168_p0 = scmp.ne.s32.totalorder %s400_s1, %s167_s21  ;;  %p171_p1 = scmp.lt.u32.totalorder %s167_s21, %s400_s1 }
   0x8   :  { %p173_p2 = pnand %p171_p1, %p168_p0 }
   0xa   :  { %176 = shalt.err (!%p173_p2)
}
   0xb   :  { %s177_s26 = scalar_lea.vmem %s32_s16, 16  ;;  %s181_s27 = scalar_lea.vmem %s32_s16, 32 }
   0xc   :  { %p178_p3 = scmp.ne.s32.totalorder %s32_s16, %s177_s26  ;;  %p182_p4 = scmp.lt.s32.totalorder %s32_s16, %s32_s16 }
   0xd   :  { %p183_p5 = scmp.lt.s32.totalorder %s181_s27, %s177_s26 }
   0xf   :  { %p184_p6 = por %p183_p5, %p182_p4 }
  0x11   :  { %p185_p7 = pnand %p184_p6, %p178_p3 }
  0x13   :  { %188 = shalt.err (!%p185_p7)
}
  0x14   :  { %34 = dma.hbm_to_vmem [thread:$0]  %s400_s1, 16, %s32_s16, [#allocation6]  }
  0x15   :  { %s189_s6 = scalar_lea.hbm %s399_s0, 256 }
  0x16   :  { %p190_p8 = scmp.ne.s32.totalorder %s399_s0, %s189_s6  ;;  %p193_p9 = scmp.lt.u32.totalorder %s189_s6, %s399_s0 }
  0x18   :  { %p195_p10 = pnand %p193_p9, %p190_p8 }
  0x1a   :  { %198 = shalt.err (!%p195_p10)
}
  0x1b   :  { %s199_s11 = scalar_lea.vmem %s319_s18, 256  ;;  %p204_p12 = scmp.lt.s32.totalorder %s319_s18, %s319_s18 }
  0x1c   :  { %p200_p11 = scmp.ne.s32.totalorder %s319_s18, %s199_s11  ;;  %p205_p13 = scmp.lt.s32.totalorder %s199_s11, %s199_s11 }
  0x1e   :  { %p206_p0 = por %p205_p13, %p204_p12 }
  0x20   :  { %p207_p1 = pnand %p206_p0, %p200_p11 }
  0x22   :  { %210 = shalt.err (!%p207_p1)
}
  0x23   :  { %s287_s1 = smov 64   ;;  %s288_s12 = smov 4  }
  0x24   :  { %24 = dma.hbm_to_vmem [thread:$0]  %s399_s0, 256, %s319_s18, [#allocation3], %s287_s1, %s287_s1, %s288_s12  }
  0x25   :  { %s289_s15 = smov [#allocation7]   ;;  %s290_s17 = smov [#allocation8]  }
  0x26   :  { %s41_s16 = sshll.u32 %s289_s15, 4  ;;  %s50_s19 = sshll.u32 %s290_s17, 4  ;;  %s42_s16 = int_to_ptr.vmem [resolvable:$true] %s41_s16  ;;  %s353_s19 = int_to_ptr.vmem [resolvable:$true] %s50_s19 }
  0x27   :  { %s211_s22 = scalar_lea.hbm %s401_s2, 16 }
  0x28   :  { %p212_p2 = scmp.ne.s32.totalorder %s401_s2, %s211_s22  ;;  %p215_p3 = scmp.lt.u32.totalorder %s211_s22, %s401_s2 }
  0x2a   :  { %p217_p4 = pnand %p215_p3, %p212_p2 }
  0x2c   :  { %220 = shalt.err (!%p217_p4)
}
  0x2d   :  { %s221_s0 = scalar_lea.vmem %s42_s16, 16  ;;  %s225_s18 = scalar_lea.vmem %s42_s16, 32 }
  0x2e   :  { %p222_p5 = scmp.ne.s32.totalorder %s42_s16, %s221_s0  ;;  %p226_p6 = scmp.lt.s32.totalorder %s42_s16, %s42_s16 }
  0x2f   :  { %p227_p7 = scmp.lt.s32.totalorder %s225_s18, %s221_s0 }
  0x31   :  { %p228_p8 = por %p227_p7, %p226_p6 }
  0x33   :  { %p229_p9 = pnand %p228_p8, %p222_p5 }
  0x35   :  { %232 = shalt.err (!%p229_p9)
}
  0x36   :  { %44 = dma.hbm_to_vmem [thread:$0]  %s401_s2, 16, %s42_s16, [#allocation6]  }
  0x37   :  { %s233_s5 = scalar_lea.hbm %s402_s3, 256 }
  0x38   :  { %p234_p10 = scmp.ne.s32.totalorder %s402_s3, %s233_s5  ;;  %p237_p11 = scmp.lt.u32.totalorder %s233_s5, %s402_s3 }
  0x3a   :  { %p239_p12 = pnand %p237_p11, %p234_p10 }
  0x3c   :  { %242 = shalt.err (!%p239_p12)
}
  0x3d   :  { %s243_s10 = scalar_lea.vmem %s353_s19, 256  ;;  %p248_p0 = scmp.lt.s32.totalorder %s353_s19, %s353_s19 }
  0x3e   :  { %p244_p13 = scmp.ne.s32.totalorder %s353_s19, %s243_s10  ;;  %p249_p1 = scmp.lt.s32.totalorder %s243_s10, %s243_s10 }
  0x40   :  { %p250_p2 = por %p249_p1, %p248_p0 }
  0x42   :  { %p251_p3 = pnand %p250_p2, %p244_p13 }
  0x44   :  { %254 = shalt.err (!%p251_p3)
}
  0x45   :  { %56 = dma.hbm_to_vmem [thread:$0]  %s402_s3, 256, %s353_s19, [#allocation9], %s287_s1, %s287_s1, %s288_s12  }
  0x46   :  { %277 = dma.done.wait [#allocation3], 256  }
  0x47   :  { %278 = vsyncadd [#allocation3], 4294967040 }
  0x48   :  { %279 = dma.done.wait [#allocation6], 32  }
  0x49   :  { %280 = vsyncadd [#allocation6], 4294967264 }
  0x4a   :  { %281 = dma.done.wait [#allocation9], 256  }
  0x4b   :  { %282 = vsyncadd [#allocation9], 4294967040  ;;  %v141_v0 = vld [vmem:[#allocation2] sm:$0xff]   ;;  %v138_v1 = vld [vmem:[#allocation5] ss:$0 sm:$0xff]  ;;  %s291_s3 = smov [#allocation10]  }
  0x4c   :  { %v142_v2 = vunpack.c.l.bf16 %v141_v0  ;;  %v149_v3 = vld [vmem:[#allocation8] sm:$0xff]   ;;  %v143_v4 = vunpack.c.h.bf16 %v141_v0  ;;  %v156_v5 = vld [vmem:[#allocation2 + $0x8] sm:$0xff]   ;;  %v157_v6 = vld [vmem:[#allocation8 + $0x8] sm:$0xff]   ;;  %s124_s1 = sshll.u32 %s291_s3, 4  ;;  %s125_s1 = int_to_ptr.vmem [resolvable:$true] %s124_s1 }
  0x4d   :  { %v139_v7 = vld [vmem:[#allocation7] ss:$0 sm:$0xff]  ;;  %v150_v8 = vunpack.c.l.bf16 %v149_v3  ;;  %v146_v9 = vunpack.c.l.bf16 %v156_v5  ;;  %v151_v12 = vunpack.c.h.bf16 %v149_v3  ;;  %v147_v13 = vunpack.c.h.bf16 %v156_v5  ;;  %s255_s12 = scalar_lea.vmem %s125_s1, 512  ;;  %p260_p5 = scmp.lt.s32.totalorder %s125_s1, %s125_s1 }
  0x4e   :  { %v84_v10 = vmul.f32 %v142_v2, %v138_v1  ;;  %v85_v11 = vmul.f32 %v143_v4, %v138_v1  ;;  %v154_v15 = vunpack.c.l.bf16 %v157_v6  ;;  %v155_v19 = vunpack.c.h.bf16 %v157_v6  ;;  %p256_p4 = scmp.ne.s32.totalorder %s125_s1, %s255_s12  ;;  %p261_p6 = scmp.lt.s32.totalorder %s255_s12, %s255_s12 }
  0x4f   :  { %v86_v14 = vmul.f32 %v146_v9, %v138_v1  ;;  %v87_v18 = vmul.f32 %v147_v13, %v138_v1 }
  0x50   :  { %v95_v16 = vadd.f32 %v139_v7, %v84_v10  ;;  %v96_v17 = vadd.f32 %v139_v7, %v85_v11  ;;  %p262_p7 = por %p261_p6, %p260_p5 }
  0x51   :  { %v97_v20 = vadd.f32 %v139_v7, %v86_v14  ;;  %v98_v23 = vadd.f32 %v139_v7, %v87_v18 }
  0x52   :  { %v107_v21 = vadd.f32 %v150_v8, %v95_v16  ;;  %v108_v22 = vadd.f32 %v151_v12, %v96_v17  ;;  %p263_p8 = pnand %p262_p7, %p256_p4 }
  0x53   :  { %v109_v24 = vadd.f32 %v154_v15, %v97_v20  ;;  %v110_v27 = vadd.f32 %v155_v19, %v98_v23 }
  0x54   :  { %v111_v25 = vmax.f32 %v107_v21, 0.0  ;;  %v112_v26 = vmax.f32 %v108_v22, 0.0 }
  0x55   :  { %v113_v28 = vmax.f32 %v109_v24, 0.0  ;;  %v114_v29 = vmax.f32 %v110_v27, 0.0 }
  0x56   :  { %115 = vst [vmem:[#allocation10] sm:$0xff] %v111_v25  ;;  %116 = vst [vmem:[#allocation10 + $0x8] sm:$0xff] %v112_v26 }
  0x57   :  { %117 = vst [vmem:[#allocation10 + $0x10] sm:$0xff] %v113_v28  ;;  %118 = vst [vmem:[#allocation10 + $0x18] sm:$0xff] %v114_v29 }
  0x58   :  { %266 = shalt.err (!%p263_p8)
}
  0x59   :  { %s267_s15 = scalar_lea.hbm %s403_s4, 512 }
  0x5a   :  { %p268_p9 = scmp.ne.s32.totalorder %s403_s4, %s267_s15  ;;  %p271_p10 = scmp.lt.u32.totalorder %s267_s15, %s403_s4 }
  0x5c   :  { %p273_p11 = pnand %p271_p10, %p268_p9 }
  0x5e   :  { %276 = shalt.err (!%p273_p11)
}
  0x5f   :  { %s292_s21 = smov 128   ;;  %s293_s22 = smov 8  }
  0x60   :  { %130 = dma.vmem_to_hbm [thread:$0]  %s125_s1, 512, %s403_s4, [#allocation4], %s292_s21, %s292_s21, %s293_s22  }
  0x61   :  { %283 = dma.done.wait [#allocation4], 512  }
  0x62   :  { %284 = vsyncadd [#allocation4], 4294966784 }
  0x63   :  { %134 = vsyncpa [#allocation3], 1 }
  0x64   :  { %135 = vsyncpa [#allocation6], 1 }
  0x65   :  { %136 = vsyncpa [#allocation9], 1 }
  0x66   :  { %137 = vsyncpa [#allocation4], 1 }

</bundles_post_ra>
